<compile_context>
chip_gen: v7x
topology: tpu7x:2x2x1
jax: 0.10.0
libtpu: 0.0.40
codegen_flags: <defaults>
</compile_context>

<pallas_src>
import functools

import jax
import jax.numpy as jnp
import numpy as np
from jax import lax
from jax.experimental import pallas as pl
from jax.experimental.pallas import tpu as pltpu


# ----------------------------- Pallas kernel -----------------------------------

def lfem_kernel(x_ref, mats_ref, bias_ref, cmb_ref, o_ref, *, W, perm, n_acc=4):
    """Block = (bt, C, H*W), channels-major per image (lanes = H*W)."""
    bt, c1, hw = x_ref.shape
    c2 = o_ref.shape[1]

    # Packed constants (one DMA each).
    w1 = mats_ref[0:2 * c2, 0:c1]          # (2c2, c1) conv1, BN1 + input-perm folded
    w3 = mats_ref[2 * c2:3 * c2, :]        # (c2, 2c2) conv3, bias/BN3/shuffle folded
    b1 = bias_ref[0:2 * c2, :]             # (2c2, 1)
    b2 = bias_ref[2 * c2:3 * c2, :]        # (c2, 1)
    b2l = bias_ref[3 * c2:4 * c2, :]       # (c2, 1)
    b3 = bias_ref[4 * c2:5 * c2, :]        # (c2, 1)

    def dwconv(tin, base, ksize):
        """Depthwise ksize x ksize conv, stride 1, 'same' zero padding.

        Each tap: XLU lane rotate (pltpu.roll) + one multiply by the
        host-prefolded (tap weight x boundary mask) slab + one add into one of
        n_acc partial accumulators (keeps the VALU slots filled).
        """
        r = ksize // 2
        accs = [None] * n_acc
        idx = 0
        for ki in range(ksize):
            for kj in range(ksize):
                off = (ki - r) * W + (kj - r)              # flat-index shift
                cm = cmb_ref[base + idx]                   # (c2, hw), tap*mask folded
                sh = tin if off == 0 else pltpu.roll(tin, (-off) % hw, axis=1)
                term = sh * cm
                slot = idx % n_acc
                accs[slot] = term if accs[slot] is None else accs[slot] + term
                idx += 1
        out = accs[0]
        for a in accs[1:]:
            if a is not None:
                out = out + a
        return out

    for b in range(bt):                                    # bt is small & static
        x_b = x_ref[b]                                     # (c1, hw)
        # channel_shuffle folded: static sublane gather in-kernel (no host
        # HBM gather pass).  xs feeds conv1 (whose input channels were
        # permuted on the host to compensate) and the residual add.
        xs = jnp.concatenate([x_b[p:p + 1, :] for p in perm], axis=0)

        # conv1 1x1 (+BN1 folded) + bias + relu.  Lane-dense N = hw MXU dot.
        # (On v6e/v7x cast the dot operands to bf16 for more MXU throughput.)
        t = jnp.dot(w1, xs, preferred_element_type=jnp.float32) + b1
        t = jnp.maximum(t, 0.0)

        # depthwise 3x3 / 5x5 (+BN2 / BN2_last folded) + relu on clean 8-row
        # slices (relu(concat(a,b)) == concat(relu(a), relu(b))).
        r1 = jnp.maximum(dwconv(t[:c2, :], 0, 3) + b2, 0.0)
        r2 = jnp.maximum(dwconv(t[c2:, :], 9, 5) + b2l, 0.0)

        # conv3 1x1 as a single K=2c2 MXU dot (sublane concat), bias + BN3 +
        # shuffle folded into w3/b3, residual add (xs already shuffle-ordered),
        # relu, lane-dense store.
        r = jnp.concatenate([r1, r2], axis=0)              # (2c2, hw)
        y = jnp.dot(w3, r, preferred_element_type=jnp.float32) + b3 + xs
        o_ref[b] = jnp.maximum(y, 0.0)


def lfem_pallas(x_nchw, kp, *, bt=None):
    """x_nchw: (B, C1, H, W) float32; kp: folded params from fold_params()."""
    B, C1, H, W = x_nchw.shape
    C2 = kp["c2"]
    assert C1 == C2, "identity residual requires c1 == c2 (downsample=None)"
    HW = H * W

    # Images per grid step: keep >=2 parallel blocks when possible (v7x has
    # 2 TensorCores); for larger batches use bigger blocks to amortize grid /
    # DMA-issue overhead (v5e/v6e prefer fewer, bigger steps).
    if bt is None:
        bt = min(B // 2, 4) if (B >= 4 and B % 2 == 0) else 1
    assert B % bt == 0

    x3 = x_nchw.reshape(B, C1, HW)   # pure reshape: no host gather/transpose pass

    consts = (kp["mats"], kp["biases"], kp["cmb"])

    def const_spec(a):
        nd = a.ndim
        return pl.BlockSpec(tuple(a.shape), lambda i: (0,) * nd)

    out = pl.pallas_call(
        functools.partial(lfem_kernel, W=W,
                          perm=tuple(int(p) for p in kp["perm"])),
        out_shape=jax.ShapeDtypeStruct((B, C2, HW), jnp.float32),
        grid=(B // bt,),
        in_specs=[pl.BlockSpec((bt, C1, HW), lambda i: (i, 0, 0))]
                 + [const_spec(a) for a in consts],
        out_specs=pl.BlockSpec((bt, C2, HW), lambda i: (i, 0, 0)),
        compiler_params=pltpu.CompilerParams(
            dimension_semantics=("parallel",)),
    )(x3, *consts)
    return out.reshape(B, C2, H, W)


# ----------------------------- reference (NCHW, PyTorch semantics) -------------

def conv_nchw(x, w, pad, groups=1):
    return lax.conv_general_dilated(
        x, w, window_strides=(1, 1),
        padding=((pad, pad), (pad, pad)),
        dimension_numbers=("NCHW", "OIHW", "NCHW"),
        feature_group_count=groups)


def bn_nchw(x, gamma, beta, mean, var, eps=1e-5):
    scale = gamma / jnp.sqrt(var + eps)
    bias = beta - mean * scale
    return x * scale[None, :, None, None] + bias[None, :, None, None]


def channel_shuffle_nchw(x, groups):
    B, C, H, W = x.shape
    return (x.reshape(B, groups, C // groups, H, W)
             .transpose(0, 2, 1, 3, 4)
             .reshape(B, C, H, W))


def lfem_reference(x, p):
    out = jax.nn.relu(bn_nchw(conv_nchw(x, p["conv1_w"], 0),
                              p["bn1_g"], p["bn1_b"], p["bn1_m"], p["bn1_v"]))
    C2 = p["conv2_w"].shape[0]
    x1, x2 = out[:, :C2], out[:, C2:]
    o1 = bn_nchw(conv_nchw(x1, p["conv2_w"], 1, groups=C2),
                 p["bn2_g"], p["bn2_b"], p["bn2_m"], p["bn2_v"])
    o2 = bn_nchw(conv_nchw(x2, p["conv2l_w"], 2, groups=C2),
                 p["bn2l_g"], p["bn2l_b"], p["bn2l_m"], p["bn2l_v"])
    out = jax.nn.relu(jnp.concatenate([o1, o2], axis=1))
    out = conv_nchw(out, p["conv3_w"], 0) + p["conv3_b"][None, :, None, None]
    out = bn_nchw(out, p["bn3_g"], p["bn3_b"], p["bn3_m"], p["bn3_v"])
    out = out + x
    out = channel_shuffle_nchw(out, 2)
    return jax.nn.relu(out)


# ----------------------------- parameter setup ----------------------------------

def make_raw_params(key, c1, c2):
    ks = jax.random.split(key, 9)
    raw = {
        "conv1_w": 0.2 * jax.random.normal(ks[0], (2 * c2, c1, 1, 1), jnp.float32),
        "conv2_w": 0.2 * jax.random.normal(ks[1], (c2, 1, 3, 3), jnp.float32),
        "conv2l_w": 0.2 * jax.random.normal(ks[2], (c2, 1, 5, 5), jnp.float32),
        "conv3_w": 0.2 * jax.random.normal(ks[3], (c2, 2 * c2, 1, 1), jnp.float32),
        "conv3_b": 0.1 * jax.random.normal(ks[4], (c2,), jnp.float32),
    }

    def bn(k, n):
        kg, kb, km, kv = jax.random.split(k, 4)
        return (1.0 + 0.1 * jax.random.normal(kg, (n,), jnp.float32),
                0.1 * jax.random.normal(kb, (n,), jnp.float32),
                0.1 * jax.random.normal(km, (n,), jnp.float32),
                1.0 + jnp.abs(jax.random.normal(kv, (n,), jnp.float32)))

    raw["bn1_g"], raw["bn1_b"], raw["bn1_m"], raw["bn1_v"] = bn(ks[5], 2 * c2)
    raw["bn2_g"], raw["bn2_b"], raw["bn2_m"], raw["bn2_v"] = bn(ks[6], c2)
    raw["bn2l_g"], raw["bn2l_b"], raw["bn2l_m"], raw["bn2l_v"] = bn(ks[7], c2)
    raw["bn3_g"], raw["bn3_b"], raw["bn3_m"], raw["bn3_v"] = bn(ks[8], c2)
    return raw


def fold_params(raw, H, W, eps=1e-5):
    """Host-side preprocessing: fold BN scales into conv weights, fold the
    channel_shuffle permutation into conv1/conv3, prefold tap weights with the
    depthwise boundary masks, and pack everything into 3 constant arrays."""
    c2 = raw["conv2_w"].shape[0]
    c1 = raw["conv1_w"].shape[1]
    assert c1 == c2, "identity residual requires c1 == c2 (downsample=None)"

    def npa(x):
        return np.asarray(x, np.float32)

    def bn_fold(pfx):
        s = npa(raw[pfx + "_g"]) / np.sqrt(npa(raw[pfx + "_v"]) + eps)
        return s, npa(raw[pfx + "_b"]) - npa(raw[pfx + "_m"]) * s

    s1, b1 = bn_fold("bn1")
    s2, b2 = bn_fold("bn2")
    s2l, b2l = bn_fold("bn2l")
    s3, b3 = bn_fold("bn3")

    # channel_shuffle(groups=2): out[k] = in[perm[k]]
    perm = np.array([(k % 2) * (c2 // 2) + k // 2 for k in range(c2)], np.int32)

    w1 = npa(raw["conv1_w"])[:, :, 0, 0]                  # (2c2, c1)
    w3 = npa(raw["conv3_w"])[:, :, 0, 0]                  # (c2, 2c2)
    w1f = (w1 * s1[:, None])[:, perm]                     # BN1 + input-perm folded
    w3f = (w3 * s3[:, None])[perm, :]                     # BN3 + shuffle folded
    b3f = (s3 * npa(raw["conv3_b"]) + b3)[perm]

    def boundary_masks(ksize):
        r = ksize // 2
        hh, ww = np.meshgrid(np.arange(H), np.arange(W), indexing="ij")
        hh, ww = hh.reshape(-1), ww.reshape(-1)
        rows = []
        for di in range(-r, r + 1):
            for dj in range(-r, r + 1):
                ok = ((hh + di >= 0) & (hh + di < H) &
                      (ww + dj >= 0) & (ww + dj < W))
                rows.append(ok.astype(np.float32))
        return np.stack(rows)                             # (k*k, H*W)

    # Prefold tap weight x boundary mask -> (taps, c2, HW) slabs.
    k3 = npa(raw["conv2_w"]).reshape(c2, 9) * s2[:, None]
    k5 = npa(raw["conv2l_w"]).reshape(c2, 25) * s2l[:, None]
    cmb3 = np.einsum("ck,kn->kcn", k3, boundary_masks(3))   # (9,  c2, HW)
    cmb5 = np.einsum("ck,kn->kcn", k5, boundary_masks(5))   # (25, c2, HW)

    # Packed weight slab: rows [0, 2c2) = conv1 (cols 0..c1), rows [2c2, 3c2) = conv3.
    mats = np.zeros((3 * c2, 2 * c2), np.float32)
    mats[:2 * c2, :c1] = w1f
    mats[2 * c2:, :] = w3f

    # Packed bias slab: [b1 | b2 | b2_last | b3(+conv3 bias, shuffled)].
    biases = np.concatenate([b1, b2, b2l, b3f])[:, None].astype(np.float32)

    return {
        "c2": c2,
        "perm": perm,
        "mats": jnp.asarray(mats),
        "biases": jnp.asarray(biases),
        "cmb": jnp.asarray(np.concatenate([cmb3, cmb5], axis=0), jnp.float32),
    }


if __name__ == "__main__":
    B, C1, H, W = 2, 8, 16, 16
    C2 = C1  # residual add requires c1 == c2 when downsample is None

    key = jax.random.PRNGKey(0)
    kx, kparam = jax.random.split(key)
    x = jax.random.normal(kx, (B, C1, H, W), jnp.float32)

    raw = make_raw_params(kparam, C1, C2)
    kern = fold_params(raw, H, W)

    out = jax.block_until_ready(lfem_pallas(x, kern))
    ref = jax.block_until_ready(lfem_reference(x, raw))

    assert out.shape == ref.shape == (B, C2, H, W)
    max_err = float(jnp.max(jnp.abs(out - ref)))
    assert jnp.allclose(out, ref, atol=1e-4, rtol=1e-4), max_err

    print("KERNEL_OK")
</pallas_src>

<mosaic_0001>
module attributes {stable_mosaic.version = 11 : i64} {
  func.func @lfem_kernel(%arg0: i32, %arg1: memref<1x8x256xf32, #tpu.memory_space<vmem>>, %arg2: memref<24x16xf32, #tpu.memory_space<vmem>>, %arg3: memref<40x1xf32, #tpu.memory_space<vmem>>, %arg4: memref<34x8x256xf32, #tpu.memory_space<vmem>>, %arg5: memref<1x8x256xf32, #tpu.memory_space<vmem>>) attributes {dimension_semantics = [#tpu.dimension_semantics<parallel>], iteration_bounds = array<i64: 2>, scalar_prefetch = 0 : i64, scratch_operands = 0 : i64, tpu.core_type = #tpu.core_type<tc>, window_params = [{transform_indices = @transform_0, window_bounds = array<i64: 1, 8, 256>}, {pipeline_mode = #tpu.pipeline_mode<synchronous>, transform_indices = @transform_1, window_bounds = array<i64: 24, 16>}, {pipeline_mode = #tpu.pipeline_mode<synchronous>, transform_indices = @transform_2, window_bounds = array<i64: 40, 1>}, {pipeline_mode = #tpu.pipeline_mode<synchronous>, transform_indices = @transform_3, window_bounds = array<i64: 34, 8, 256>}, {transform_indices = @transform_4, window_bounds = array<i64: 1, 8, 256>}]} {
    %c0 = arith.constant 0 : index
    %c0_0 = arith.constant 0 : index
    %0 = vector.load %arg2[%c0, %c0_0] : memref<24x16xf32, #tpu.memory_space<vmem>>, vector<16x8xf32>
    %c16 = arith.constant 16 : index
    %c0_1 = arith.constant 0 : index
    %1 = vector.load %arg2[%c16, %c0_1] : memref<24x16xf32, #tpu.memory_space<vmem>>, vector<8x16xf32>
    %c0_2 = arith.constant 0 : index
    %c0_3 = arith.constant 0 : index
    %2 = vector.load %arg3[%c0_2, %c0_3] : memref<40x1xf32, #tpu.memory_space<vmem>>, vector<16x1xf32>
    %c16_4 = arith.constant 16 : index
    %c0_5 = arith.constant 0 : index
    %3 = vector.load %arg3[%c16_4, %c0_5] : memref<40x1xf32, #tpu.memory_space<vmem>>, vector<8x1xf32>
    %c24 = arith.constant 24 : index
    %c0_6 = arith.constant 0 : index
    %4 = vector.load %arg3[%c24, %c0_6] : memref<40x1xf32, #tpu.memory_space<vmem>>, vector<8x1xf32>
    %c32 = arith.constant 32 : index
    %c0_7 = arith.constant 0 : index
    %5 = vector.load %arg3[%c32, %c0_7] : memref<40x1xf32, #tpu.memory_space<vmem>>, vector<8x1xf32>
    %c0_8 = arith.constant 0 : index
    %c0_9 = arith.constant 0 : index
    %c0_10 = arith.constant 0 : index
    %6 = vector.load %arg1[%c0_8, %c0_9, %c0_10] : memref<1x8x256xf32, #tpu.memory_space<vmem>>, vector<1x8x256xf32>
    %7 = vector.shape_cast %6 : vector<1x8x256xf32> to vector<8x256xf32>
    %8 = vector.extract_strided_slice %7 {offsets = [0, 0], sizes = [1, 256], strides = [1, 1]} : vector<8x256xf32> to vector<1x256xf32>
    %9 = vector.extract_strided_slice %7 {offsets = [4, 0], sizes = [1, 256], strides = [1, 1]} : vector<8x256xf32> to vector<1x256xf32>
    %10 = vector.extract_strided_slice %7 {offsets = [1, 0], sizes = [1, 256], strides = [1, 1]} : vector<8x256xf32> to vector<1x256xf32>
    %11 = vector.extract_strided_slice %7 {offsets = [5, 0], sizes = [1, 256], strides = [1, 1]} : vector<8x256xf32> to vector<1x256xf32>
    %12 = vector.extract_strided_slice %7 {offsets = [2, 0], sizes = [1, 256], strides = [1, 1]} : vector<8x256xf32> to vector<1x256xf32>
    %13 = vector.extract_strided_slice %7 {offsets = [6, 0], sizes = [1, 256], strides = [1, 1]} : vector<8x256xf32> to vector<1x256xf32>
    %14 = vector.extract_strided_slice %7 {offsets = [3, 0], sizes = [1, 256], strides = [1, 1]} : vector<8x256xf32> to vector<1x256xf32>
    %15 = vector.extract_strided_slice %7 {offsets = [7, 0], sizes = [1, 256], strides = [1, 1]} : vector<8x256xf32> to vector<1x256xf32>
    %16 = tpu.concatenate %8, %9, %10, %11, %12, %13, %14, %15 in 0 : vector<1x256xf32>, vector<1x256xf32>, vector<1x256xf32>, vector<1x256xf32>, vector<1x256xf32>, vector<1x256xf32>, vector<1x256xf32>, vector<1x256xf32> -> vector<8x256xf32>
    %cst = arith.constant dense<0.000000e+00> : vector<16x256xf32>
    %17 = tpu.matmul %0, %16, %cst {dimension_numbers = #tpu.dot_dimension_numbers<[1], [0], [0], [1], [0, 0, 1, 1], [], []>} : vector<16x8xf32>, vector<8x256xf32>, vector<16x256xf32> -> vector<16x256xf32>
    %18 = vector.broadcast %2 : vector<16x1xf32> to vector<16x256xf32>
    %19 = arith.addf %17, %18 : vector<16x256xf32>
    %cst_11 = arith.constant 0.000000e+00 : f32
    %20 = vector.broadcast %cst_11 : f32 to vector<16x256xf32>
    %21 = arith.maximumf %19, %20 : vector<16x256xf32>
    %22 = vector.extract_strided_slice %21 {offsets = [0, 0], sizes = [8, 256], strides = [1, 1]} : vector<16x256xf32> to vector<8x256xf32>
    %c0_12 = arith.constant 0 : index
    %c0_13 = arith.constant 0 : index
    %c0_14 = arith.constant 0 : index
    %23 = vector.load %arg4[%c0_12, %c0_13, %c0_14] : memref<34x8x256xf32, #tpu.memory_space<vmem>>, vector<1x8x256xf32>
    %24 = vector.shape_cast %23 : vector<1x8x256xf32> to vector<8x256xf32>
    %c17_i32 = arith.constant 17 : i32
    %25 = tpu.dynamic_rotate %22 by %c17_i32 dim 1 : vector<8x256xf32>, i32 -> vector<8x256xf32>
    %26 = arith.mulf %25, %24 : vector<8x256xf32>
    %c1 = arith.constant 1 : index
    %c0_15 = arith.constant 0 : index
    %c0_16 = arith.constant 0 : index
    %27 = vector.load %arg4[%c1, %c0_15, %c0_16] : memref<34x8x256xf32, #tpu.memory_space<vmem>>, vector<1x8x256xf32>
    %28 = vector.shape_cast %27 : vector<1x8x256xf32> to vector<8x256xf32>
    %c16_i32 = arith.constant 16 : i32
    %29 = tpu.dynamic_rotate %22 by %c16_i32 dim 1 : vector<8x256xf32>, i32 -> vector<8x256xf32>
    %30 = arith.mulf %29, %28 : vector<8x256xf32>
    %c2 = arith.constant 2 : index
    %c0_17 = arith.constant 0 : index
    %c0_18 = arith.constant 0 : index
    %31 = vector.load %arg4[%c2, %c0_17, %c0_18] : memref<34x8x256xf32, #tpu.memory_space<vmem>>, vector<1x8x256xf32>
    %32 = vector.shape_cast %31 : vector<1x8x256xf32> to vector<8x256xf32>
    %c15_i32 = arith.constant 15 : i32
    %33 = tpu.dynamic_rotate %22 by %c15_i32 dim 1 : vector<8x256xf32>, i32 -> vector<8x256xf32>
    %34 = arith.mulf %33, %32 : vector<8x256xf32>
    %c3 = arith.constant 3 : index
    %c0_19 = arith.constant 0 : index
    %c0_20 = arith.constant 0 : index
    %35 = vector.load %arg4[%c3, %c0_19, %c0_20] : memref<34x8x256xf32, #tpu.memory_space<vmem>>, vector<1x8x256xf32>
    %36 = vector.shape_cast %35 : vector<1x8x256xf32> to vector<8x256xf32>
    %c1_i32 = arith.constant 1 : i32
    %37 = tpu.dynamic_rotate %22 by %c1_i32 dim 1 : vector<8x256xf32>, i32 -> vector<8x256xf32>
    %38 = arith.mulf %37, %36 : vector<8x256xf32>
    %c4 = arith.constant 4 : index
    %c0_21 = arith.constant 0 : index
    %c0_22 = arith.constant 0 : index
    %39 = vector.load %arg4[%c4, %c0_21, %c0_22] : memref<34x8x256xf32, #tpu.memory_space<vmem>>, vector<1x8x256xf32>
    %40 = vector.shape_cast %39 : vector<1x8x256xf32> to vector<8x256xf32>
    %41 = arith.mulf %22, %40 : vector<8x256xf32>
    %42 = arith.addf %26, %41 : vector<8x256xf32>
    %c5 = arith.constant 5 : index
    %c0_23 = arith.constant 0 : index
    %c0_24 = arith.constant 0 : index
    %43 = vector.load %arg4[%c5, %c0_23, %c0_24] : memref<34x8x256xf32, #tpu.memory_space<vmem>>, vector<1x8x256xf32>
    %44 = vector.shape_cast %43 : vector<1x8x256xf32> to vector<8x256xf32>
    %c255_i32 = arith.constant 255 : i32
    %45 = tpu.dynamic_rotate %22 by %c255_i32 dim 1 : vector<8x256xf32>, i32 -> vector<8x256xf32>
    %46 = arith.mulf %45, %44 : vector<8x256xf32>
    %47 = arith.addf %30, %46 : vector<8x256xf32>
    %c6 = arith.constant 6 : index
    %c0_25 = arith.constant 0 : index
    %c0_26 = arith.constant 0 : index
    %48 = vector.load %arg4[%c6, %c0_25, %c0_26] : memref<34x8x256xf32, #tpu.memory_space<vmem>>, vector<1x8x256xf32>
    %49 = vector.shape_cast %48 : vector<1x8x256xf32> to vector<8x256xf32>
    %c241_i32 = arith.constant 241 : i32
    %50 = tpu.dynamic_rotate %22 by %c241_i32 dim 1 : vector<8x256xf32>, i32 -> vector<8x256xf32>
    %51 = arith.mulf %50, %49 : vector<8x256xf32>
    %52 = arith.addf %34, %51 : vector<8x256xf32>
    %c7 = arith.constant 7 : index
    %c0_27 = arith.constant 0 : index
    %c0_28 = arith.constant 0 : index
    %53 = vector.load %arg4[%c7, %c0_27, %c0_28] : memref<34x8x256xf32, #tpu.memory_space<vmem>>, vector<1x8x256xf32>
    %54 = vector.shape_cast %53 : vector<1x8x256xf32> to vector<8x256xf32>
    %c240_i32 = arith.constant 240 : i32
    %55 = tpu.dynamic_rotate %22 by %c240_i32 dim 1 : vector<8x256xf32>, i32 -> vector<8x256xf32>
    %56 = arith.mulf %55, %54 : vector<8x256xf32>
    %57 = arith.addf %38, %56 : vector<8x256xf32>
    %c8 = arith.constant 8 : index
    %c0_29 = arith.constant 0 : index
    %c0_30 = arith.constant 0 : index
    %58 = vector.load %arg4[%c8, %c0_29, %c0_30] : memref<34x8x256xf32, #tpu.memory_space<vmem>>, vector<1x8x256xf32>
    %59 = vector.shape_cast %58 : vector<1x8x256xf32> to vector<8x256xf32>
    %c239_i32 = arith.constant 239 : i32
    %60 = tpu.dynamic_rotate %22 by %c239_i32 dim 1 : vector<8x256xf32>, i32 -> vector<8x256xf32>
    %61 = arith.mulf %60, %59 : vector<8x256xf32>
    %62 = arith.addf %42, %61 : vector<8x256xf32>
    %63 = arith.addf %62, %47 : vector<8x256xf32>
    %64 = arith.addf %63, %52 : vector<8x256xf32>
    %65 = arith.addf %64, %57 : vector<8x256xf32>
    %66 = vector.broadcast %3 : vector<8x1xf32> to vector<8x256xf32>
    %67 = arith.addf %65, %66 : vector<8x256xf32>
    %cst_31 = arith.constant 0.000000e+00 : f32
    %68 = vector.broadcast %cst_31 : f32 to vector<8x256xf32>
    %69 = arith.maximumf %67, %68 : vector<8x256xf32>
    %70 = vector.extract_strided_slice %21 {offsets = [8, 0], sizes = [8, 256], strides = [1, 1]} : vector<16x256xf32> to vector<8x256xf32>
    %c9 = arith.constant 9 : index
    %c0_32 = arith.constant 0 : index
    %c0_33 = arith.constant 0 : index
    %71 = vector.load %arg4[%c9, %c0_32, %c0_33] : memref<34x8x256xf32, #tpu.memory_space<vmem>>, vector<1x8x256xf32>
    %72 = vector.shape_cast %71 : vector<1x8x256xf32> to vector<8x256xf32>
    %c34_i32 = arith.constant 34 : i32
    %73 = tpu.dynamic_rotate %70 by %c34_i32 dim 1 : vector<8x256xf32>, i32 -> vector<8x256xf32>
    %74 = arith.mulf %73, %72 : vector<8x256xf32>
    %c10 = arith.constant 10 : index
    %c0_34 = arith.constant 0 : index
    %c0_35 = arith.constant 0 : index
    %75 = vector.load %arg4[%c10, %c0_34, %c0_35] : memref<34x8x256xf32, #tpu.memory_space<vmem>>, vector<1x8x256xf32>
    %76 = vector.shape_cast %75 : vector<1x8x256xf32> to vector<8x256xf32>
    %c33_i32 = arith.constant 33 : i32
    %77 = tpu.dynamic_rotate %70 by %c33_i32 dim 1 : vector<8x256xf32>, i32 -> vector<8x256xf32>
    %78 = arith.mulf %77, %76 : vector<8x256xf32>
    %c11 = arith.constant 11 : index
    %c0_36 = arith.constant 0 : index
    %c0_37 = arith.constant 0 : index
    %79 = vector.load %arg4[%c11, %c0_36, %c0_37] : memref<34x8x256xf32, #tpu.memory_space<vmem>>, vector<1x8x256xf32>
    %80 = vector.shape_cast %79 : vector<1x8x256xf32> to vector<8x256xf32>
    %c32_i32 = arith.constant 32 : i32
    %81 = tpu.dynamic_rotate %70 by %c32_i32 dim 1 : vector<8x256xf32>, i32 -> vector<8x256xf32>
    %82 = arith.mulf %81, %80 : vector<8x256xf32>
    %c12 = arith.constant 12 : index
    %c0_38 = arith.constant 0 : index
    %c0_39 = arith.constant 0 : index
    %83 = vector.load %arg4[%c12, %c0_38, %c0_39] : memref<34x8x256xf32, #tpu.memory_space<vmem>>, vector<1x8x256xf32>
    %84 = vector.shape_cast %83 : vector<1x8x256xf32> to vector<8x256xf32>
    %c31_i32 = arith.constant 31 : i32
    %85 = tpu.dynamic_rotate %70 by %c31_i32 dim 1 : vector<8x256xf32>, i32 -> vector<8x256xf32>
    %86 = arith.mulf %85, %84 : vector<8x256xf32>
    %c13 = arith.constant 13 : index
    %c0_40 = arith.constant 0 : index
    %c0_41 = arith.constant 0 : index
    %87 = vector.load %arg4[%c13, %c0_40, %c0_41] : memref<34x8x256xf32, #tpu.memory_space<vmem>>, vector<1x8x256xf32>
    %88 = vector.shape_cast %87 : vector<1x8x256xf32> to vector<8x256xf32>
    %c30_i32 = arith.constant 30 : i32
    %89 = tpu.dynamic_rotate %70 by %c30_i32 dim 1 : vector<8x256xf32>, i32 -> vector<8x256xf32>
    %90 = arith.mulf %89, %88 : vector<8x256xf32>
    %91 = arith.addf %74, %90 : vector<8x256xf32>
    %c14 = arith.constant 14 : index
    %c0_42 = arith.constant 0 : index
    %c0_43 = arith.constant 0 : index
    %92 = vector.load %arg4[%c14, %c0_42, %c0_43] : memref<34x8x256xf32, #tpu.memory_space<vmem>>, vector<1x8x256xf32>
    %93 = vector.shape_cast %92 : vector<1x8x256xf32> to vector<8x256xf32>
    %c18_i32 = arith.constant 18 : i32
    %94 = tpu.dynamic_rotate %70 by %c18_i32 dim 1 : vector<8x256xf32>, i32 -> vector<8x256xf32>
    %95 = arith.mulf %94, %93 : vector<8x256xf32>
    %96 = arith.addf %78, %95 : vector<8x256xf32>
    %c15 = arith.constant 15 : index
    %c0_44 = arith.constant 0 : index
    %c0_45 = arith.constant 0 : index
    %97 = vector.load %arg4[%c15, %c0_44, %c0_45] : memref<34x8x256xf32, #tpu.memory_space<vmem>>, vector<1x8x256xf32>
    %98 = vector.shape_cast %97 : vector<1x8x256xf32> to vector<8x256xf32>
    %c17_i32_46 = arith.constant 17 : i32
    %99 = tpu.dynamic_rotate %70 by %c17_i32_46 dim 1 : vector<8x256xf32>, i32 -> vector<8x256xf32>
    %100 = arith.mulf %99, %98 : vector<8x256xf32>
    %101 = arith.addf %82, %100 : vector<8x256xf32>
    %c16_47 = arith.constant 16 : index
    %c0_48 = arith.constant 0 : index
    %c0_49 = arith.constant 0 : index
    %102 = vector.load %arg4[%c16_47, %c0_48, %c0_49] : memref<34x8x256xf32, #tpu.memory_space<vmem>>, vector<1x8x256xf32>
    %103 = vector.shape_cast %102 : vector<1x8x256xf32> to vector<8x256xf32>
    %c16_i32_50 = arith.constant 16 : i32
    %104 = tpu.dynamic_rotate %70 by %c16_i32_50 dim 1 : vector<8x256xf32>, i32 -> vector<8x256xf32>
    %105 = arith.mulf %104, %103 : vector<8x256xf32>
    %106 = arith.addf %86, %105 : vector<8x256xf32>
    %c17 = arith.constant 17 : index
    %c0_51 = arith.constant 0 : index
    %c0_52 = arith.constant 0 : index
    %107 = vector.load %arg4[%c17, %c0_51, %c0_52] : memref<34x8x256xf32, #tpu.memory_space<vmem>>, vector<1x8x256xf32>
    %108 = vector.shape_cast %107 : vector<1x8x256xf32> to vector<8x256xf32>
    %c15_i32_53 = arith.constant 15 : i32
    %109 = tpu.dynamic_rotate %70 by %c15_i32_53 dim 1 : vector<8x256xf32>, i32 -> vector<8x256xf32>
    %110 = arith.mulf %109, %108 : vector<8x256xf32>
    %111 = arith.addf %91, %110 : vector<8x256xf32>
    %c18 = arith.constant 18 : index
    %c0_54 = arith.constant 0 : index
    %c0_55 = arith.constant 0 : index
    %112 = vector.load %arg4[%c18, %c0_54, %c0_55] : memref<34x8x256xf32, #tpu.memory_space<vmem>>, vector<1x8x256xf32>
    %113 = vector.shape_cast %112 : vector<1x8x256xf32> to vector<8x256xf32>
    %c14_i32 = arith.constant 14 : i32
    %114 = tpu.dynamic_rotate %70 by %c14_i32 dim 1 : vector<8x256xf32>, i32 -> vector<8x256xf32>
    %115 = arith.mulf %114, %113 : vector<8x256xf32>
    %116 = arith.addf %96, %115 : vector<8x256xf32>
    %c19 = arith.constant 19 : index
    %c0_56 = arith.constant 0 : index
    %c0_57 = arith.constant 0 : index
    %117 = vector.load %arg4[%c19, %c0_56, %c0_57] : memref<34x8x256xf32, #tpu.memory_space<vmem>>, vector<1x8x256xf32>
    %118 = vector.shape_cast %117 : vector<1x8x256xf32> to vector<8x256xf32>
    %c2_i32 = arith.constant 2 : i32
    %119 = tpu.dynamic_rotate %70 by %c2_i32 dim 1 : vector<8x256xf32>, i32 -> vector<8x256xf32>
    %120 = arith.mulf %119, %118 : vector<8x256xf32>
    %121 = arith.addf %101, %120 : vector<8x256xf32>
    %c20 = arith.constant 20 : index
    %c0_58 = arith.constant 0 : index
    %c0_59 = arith.constant 0 : index
    %122 = vector.load %arg4[%c20, %c0_58, %c0_59] : memref<34x8x256xf32, #tpu.memory_space<vmem>>, vector<1x8x256xf32>
    %123 = vector.shape_cast %122 : vector<1x8x256xf32> to vector<8x256xf32>
    %c1_i32_60 = arith.constant 1 : i32
    %124 = tpu.dynamic_rotate %70 by %c1_i32_60 dim 1 : vector<8x256xf32>, i32 -> vector<8x256xf32>
    %125 = arith.mulf %124, %123 : vector<8x256xf32>
    %126 = arith.addf %106, %125 : vector<8x256xf32>
    %c21 = arith.constant 21 : index
    %c0_61 = arith.constant 0 : index
    %c0_62 = arith.constant 0 : index
    %127 = vector.load %arg4[%c21, %c0_61, %c0_62] : memref<34x8x256xf32, #tpu.memory_space<vmem>>, vector<1x8x256xf32>
    %128 = vector.shape_cast %127 : vector<1x8x256xf32> to vector<8x256xf32>
    %129 = arith.mulf %70, %128 : vector<8x256xf32>
    %130 = arith.addf %111, %129 : vector<8x256xf32>
    %c22 = arith.constant 22 : index
    %c0_63 = arith.constant 0 : index
    %c0_64 = arith.constant 0 : index
    %131 = vector.load %arg4[%c22, %c0_63, %c0_64] : memref<34x8x256xf32, #tpu.memory_space<vmem>>, vector<1x8x256xf32>
    %132 = vector.shape_cast %131 : vector<1x8x256xf32> to vector<8x256xf32>
    %c255_i32_65 = arith.constant 255 : i32
    %133 = tpu.dynamic_rotate %70 by %c255_i32_65 dim 1 : vector<8x256xf32>, i32 -> vector<8x256xf32>
    %134 = arith.mulf %133, %132 : vector<8x256xf32>
    %135 = arith.addf %116, %134 : vector<8x256xf32>
    %c23 = arith.constant 23 : index
    %c0_66 = arith.constant 0 : index
    %c0_67 = arith.constant 0 : index
    %136 = vector.load %arg4[%c23, %c0_66, %c0_67] : memref<34x8x256xf32, #tpu.memory_space<vmem>>, vector<1x8x256xf32>
    %137 = vector.shape_cast %136 : vector<1x8x256xf32> to vector<8x256xf32>
    %c254_i32 = arith.constant 254 : i32
    %138 = tpu.dynamic_rotate %70 by %c254_i32 dim 1 : vector<8x256xf32>, i32 -> vector<8x256xf32>
    %139 = arith.mulf %138, %137 : vector<8x256xf32>
    %140 = arith.addf %121, %139 : vector<8x256xf32>
    %c24_68 = arith.constant 24 : index
    %c0_69 = arith.constant 0 : index
    %c0_70 = arith.constant 0 : index
    %141 = vector.load %arg4[%c24_68, %c0_69, %c0_70] : memref<34x8x256xf32, #tpu.memory_space<vmem>>, vector<1x8x256xf32>
    %142 = vector.shape_cast %141 : vector<1x8x256xf32> to vector<8x256xf32>
    %c242_i32 = arith.constant 242 : i32
    %143 = tpu.dynamic_rotate %70 by %c242_i32 dim 1 : vector<8x256xf32>, i32 -> vector<8x256xf32>
    %144 = arith.mulf %143, %142 : vector<8x256xf32>
    %145 = arith.addf %126, %144 : vector<8x256xf32>
    %c25 = arith.constant 25 : index
    %c0_71 = arith.constant 0 : index
    %c0_72 = arith.constant 0 : index
    %146 = vector.load %arg4[%c25, %c0_71, %c0_72] : memref<34x8x256xf32, #tpu.memory_space<vmem>>, vector<1x8x256xf32>
    %147 = vector.shape_cast %146 : vector<1x8x256xf32> to vector<8x256xf32>
    %c241_i32_73 = arith.constant 241 : i32
    %148 = tpu.dynamic_rotate %70 by %c241_i32_73 dim 1 : vector<8x256xf32>, i32 -> vector<8x256xf32>
    %149 = arith.mulf %148, %147 : vector<8x256xf32>
    %150 = arith.addf %130, %149 : vector<8x256xf32>
    %c26 = arith.constant 26 : index
    %c0_74 = arith.constant 0 : index
    %c0_75 = arith.constant 0 : index
    %151 = vector.load %arg4[%c26, %c0_74, %c0_75] : memref<34x8x256xf32, #tpu.memory_space<vmem>>, vector<1x8x256xf32>
    %152 = vector.shape_cast %151 : vector<1x8x256xf32> to vector<8x256xf32>
    %c240_i32_76 = arith.constant 240 : i32
    %153 = tpu.dynamic_rotate %70 by %c240_i32_76 dim 1 : vector<8x256xf32>, i32 -> vector<8x256xf32>
    %154 = arith.mulf %153, %152 : vector<8x256xf32>
    %155 = arith.addf %135, %154 : vector<8x256xf32>
    %c27 = arith.constant 27 : index
    %c0_77 = arith.constant 0 : index
    %c0_78 = arith.constant 0 : index
    %156 = vector.load %arg4[%c27, %c0_77, %c0_78] : memref<34x8x256xf32, #tpu.memory_space<vmem>>, vector<1x8x256xf32>
    %157 = vector.shape_cast %156 : vector<1x8x256xf32> to vector<8x256xf32>
    %c239_i32_79 = arith.constant 239 : i32
    %158 = tpu.dynamic_rotate %70 by %c239_i32_79 dim 1 : vector<8x256xf32>, i32 -> vector<8x256xf32>
    %159 = arith.mulf %158, %157 : vector<8x256xf32>
    %160 = arith.addf %140, %159 : vector<8x256xf32>
    %c28 = arith.constant 28 : index
    %c0_80 = arith.constant 0 : index
    %c0_81 = arith.constant 0 : index
    %161 = vector.load %arg4[%c28, %c0_80, %c0_81] : memref<34x8x256xf32, #tpu.memory_space<vmem>>, vector<1x8x256xf32>
    %162 = vector.shape_cast %161 : vector<1x8x256xf32> to vector<8x256xf32>
    %c238_i32 = arith.constant 238 : i32
    %163 = tpu.dynamic_rotate %70 by %c238_i32 dim 1 : vector<8x256xf32>, i32 -> vector<8x256xf32>
    %164 = arith.mulf %163, %162 : vector<8x256xf32>
    %165 = arith.addf %145, %164 : vector<8x256xf32>
    %c29 = arith.constant 29 : index
    %c0_82 = arith.constant 0 : index
    %c0_83 = arith.constant 0 : index
    %166 = vector.load %arg4[%c29, %c0_82, %c0_83] : memref<34x8x256xf32, #tpu.memory_space<vmem>>, vector<1x8x256xf32>
    %167 = vector.shape_cast %166 : vector<1x8x256xf32> to vector<8x256xf32>
    %c226_i32 = arith.constant 226 : i32
    %168 = tpu.dynamic_rotate %70 by %c226_i32 dim 1 : vector<8x256xf32>, i32 -> vector<8x256xf32>
    %169 = arith.mulf %168, %167 : vector<8x256xf32>
    %170 = arith.addf %150, %169 : vector<8x256xf32>
    %c30 = arith.constant 30 : index
    %c0_84 = arith.constant 0 : index
    %c0_85 = arith.constant 0 : index
    %171 = vector.load %arg4[%c30, %c0_84, %c0_85] : memref<34x8x256xf32, #tpu.memory_space<vmem>>, vector<1x8x256xf32>
    %172 = vector.shape_cast %171 : vector<1x8x256xf32> to vector<8x256xf32>
    %c225_i32 = arith.constant 225 : i32
    %173 = tpu.dynamic_rotate %70 by %c225_i32 dim 1 : vector<8x256xf32>, i32 -> vector<8x256xf32>
    %174 = arith.mulf %173, %172 : vector<8x256xf32>
    %175 = arith.addf %155, %174 : vector<8x256xf32>
    %c31 = arith.constant 31 : index
    %c0_86 = arith.constant 0 : index
    %c0_87 = arith.constant 0 : index
    %176 = vector.load %arg4[%c31, %c0_86, %c0_87] : memref<34x8x256xf32, #tpu.memory_space<vmem>>, vector<1x8x256xf32>
    %177 = vector.shape_cast %176 : vector<1x8x256xf32> to vector<8x256xf32>
    %c224_i32 = arith.constant 224 : i32
    %178 = tpu.dynamic_rotate %70 by %c224_i32 dim 1 : vector<8x256xf32>, i32 -> vector<8x256xf32>
    %179 = arith.mulf %178, %177 : vector<8x256xf32>
    %180 = arith.addf %160, %179 : vector<8x256xf32>
    %c32_88 = arith.constant 32 : index
    %c0_89 = arith.constant 0 : index
    %c0_90 = arith.constant 0 : index
    %181 = vector.load %arg4[%c32_88, %c0_89, %c0_90] : memref<34x8x256xf32, #tpu.memory_space<vmem>>, vector<1x8x256xf32>
    %182 = vector.shape_cast %181 : vector<1x8x256xf32> to vector<8x256xf32>
    %c223_i32 = arith.constant 223 : i32
    %183 = tpu.dynamic_rotate %70 by %c223_i32 dim 1 : vector<8x256xf32>, i32 -> vector<8x256xf32>
    %184 = arith.mulf %183, %182 : vector<8x256xf32>
    %185 = arith.addf %165, %184 : vector<8x256xf32>
    %c33 = arith.constant 33 : index
    %c0_91 = arith.constant 0 : index
    %c0_92 = arith.constant 0 : index
    %186 = vector.load %arg4[%c33, %c0_91, %c0_92] : memref<34x8x256xf32, #tpu.memory_space<vmem>>, vector<1x8x256xf32>
    %187 = vector.shape_cast %186 : vector<1x8x256xf32> to vector<8x256xf32>
    %c222_i32 = arith.constant 222 : i32
    %188 = tpu.dynamic_rotate %70 by %c222_i32 dim 1 : vector<8x256xf32>, i32 -> vector<8x256xf32>
    %189 = arith.mulf %188, %187 : vector<8x256xf32>
    %190 = arith.addf %170, %189 : vector<8x256xf32>
    %191 = arith.addf %190, %175 : vector<8x256xf32>
    %192 = arith.addf %191, %180 : vector<8x256xf32>
    %193 = arith.addf %192, %185 : vector<8x256xf32>
    %194 = vector.broadcast %4 : vector<8x1xf32> to vector<8x256xf32>
    %195 = arith.addf %193, %194 : vector<8x256xf32>
    %cst_93 = arith.constant 0.000000e+00 : f32
    %196 = vector.broadcast %cst_93 : f32 to vector<8x256xf32>
    %197 = arith.maximumf %195, %196 : vector<8x256xf32>
    %198 = tpu.concatenate %69, %197 in 0 : vector<8x256xf32>, vector<8x256xf32> -> vector<16x256xf32>
    %cst_94 = arith.constant dense<0.000000e+00> : vector<8x256xf32>
    %199 = tpu.matmul %1, %198, %cst_94 {dimension_numbers = #tpu.dot_dimension_numbers<[1], [0], [0], [1], [0, 0, 1, 1], [], []>} : vector<8x16xf32>, vector<16x256xf32>, vector<8x256xf32> -> vector<8x256xf32>
    %200 = vector.broadcast %5 : vector<8x1xf32> to vector<8x256xf32>
    %201 = arith.addf %199, %200 : vector<8x256xf32>
    %202 = arith.addf %201, %16 : vector<8x256xf32>
    %cst_95 = arith.constant 0.000000e+00 : f32
    %203 = vector.broadcast %cst_95 : f32 to vector<8x256xf32>
    %204 = arith.maximumf %202, %203 : vector<8x256xf32>
    %c0_96 = arith.constant 0 : index
    %c0_97 = arith.constant 0 : index
    %c0_98 = arith.constant 0 : index
    %205 = vector.load %arg5[%c0_96, %c0_97, %c0_98] : memref<1x8x256xf32, #tpu.memory_space<vmem>>, vector<1x8x256xf32>
    %206 = vector.shape_cast %205 : vector<1x8x256xf32> to vector<8x256xf32>
    %207 = vector.shape_cast %204 : vector<8x256xf32> to vector<1x8x256xf32>
    tpu.vector_store %arg5[%c0_96, %c0_97, %c0_98], %207 {strides = array<i32>} : memref<1x8x256xf32, #tpu.memory_space<vmem>>, vector<1x8x256xf32>,
    return
  }
  func.func @transform_0(%arg0: i32) -> (i32, i32, i32) {
    %c0_i32 = arith.constant 0 : i32
    %c0_i32_0 = arith.constant 0 : i32
    %c0_i32_1 = arith.constant 0 : i32
    return %arg0, %c0_i32, %c0_i32_0 : i32, i32, i32
  }
  func.func @transform_1(%arg0: i32) -> (i32, i32) {
    %c0_i32 = arith.constant 0 : i32
    %c0_i32_0 = arith.constant 0 : i32
    %c0_i32_1 = arith.constant 0 : i32
    return %c0_i32, %c0_i32_0 : i32, i32
  }
  func.func @transform_2(%arg0: i32) -> (i32, i32) {
    %c0_i32 = arith.constant 0 : i32
    %c0_i32_0 = arith.constant 0 : i32
    %c0_i32_1 = arith.constant 0 : i32
    return %c0_i32, %c0_i32_0 : i32, i32
  }
  func.func @transform_3(%arg0: i32) -> (i32, i32, i32) {
    %c0_i32 = arith.constant 0 : i32
    %c0_i32_0 = arith.constant 0 : i32
    %c0_i32_1 = arith.constant 0 : i32
    %c0_i32_2 = arith.constant 0 : i32
    return %c0_i32, %c0_i32_0, %c0_i32_1 : i32, i32, i32
  }
  func.func @transform_4(%arg0: i32) -> (i32, i32, i32) {
    %c0_i32 = arith.constant 0 : i32
    %c0_i32_0 = arith.constant 0 : i32
    %c0_i32_1 = arith.constant 0 : i32
    return %arg0, %c0_i32, %c0_i32_0 : i32, i32, i32
  }
}

</mosaic_0001>

<bundles_post_ra>
// kernel: tpu_custom_call.1
= control target key start
LH: loop header
LB: loop body
LE: loop exit
PB: predicated region body
PF: predicated region fallthrough
CT: control target
= control target key end

     0   :  { %9 = vsyncpa [#allocation3], 0  ;;  %s1770_s0 = inlined_call_operand.vmem [shape: f32[2,8,256], index: 0, kind: input, shape index: {}]   ;;  %s1771_s1 = inlined_call_operand.vmem [shape: f32[24,16], index: 1, kind: input, shape index: {}]   ;;  %s1772_s2 = inlined_call_operand.vmem [shape: f32[40,1], index: 2, kind: input, shape index: {}]   ;;  %s1773_s3 = inlined_call_operand.hbm [shape: f32[34,8,256], index: 3, kind: input, shape index: {}]   ;;  %s1774_s4 = inlined_call_operand.hbm [shape: f32[2,8,256], index: 4, kind: output, shape index: {}]  }
   0x1   :  { %10 = vsyncpa [#allocation4], 0 }
   0x2   :  { %12 = vsyncpa [#allocation4 + $0x1], 0  ;;  %s1261_s15 = smov 0   ;;  %s1263_s16 = smov 0  }
   0x3   :  { %s1265_s17 = smov 0   ;;  %s1267_s18 = smov 0  }
   0x4 LB: > { %s1282_s19 = sadd.s32 4294967295, %s1204_s18   ;;  %s1007_s20 = sadd.s32 4294967294, %s1204_s18   ;;  %s1204_s18 = sphi %s1267_s18, %s1790_s18   ;;  %s1200_s17 = sphi %s1265_s17, %s1789_s17   ;;  %s1196_s16 = sphi %s1263_s16, %s1788_s16   ;;  %s1192_s15 = sphi %s1261_s15, %s1787_s15  }
   0x5   : > { %s1286_s21 = sadd.s32 1, %s1204_s18   ;;  %s114_s22 = sadd.s32 1, %s1200_s17 }
   0x6   : > { %s111_s23 = ssub.s32 %s1204_s18, %s1286_s21  ;;  %p124_p0 = scmp.ne.s32.totalorder %s1200_s17, %s1196_s16 }
   0x7   : > { %p112_p1 = scmp.eq.s32.totalorder %s111_s23, 0  ;;  %p125_p2 = scmp.eq.s32.totalorder %s1282_s19, 1 }
   0x8   : > { %p130_p3 = scmp.ne.s32.totalorder %s1196_s16, %s1192_s15  ;;  %p131_p4 = scmp.eq.s32.totalorder %s1007_s20, 1 }
   0x9   : > { %s1297_s24 = scalar_select %p112_p1, %s1200_s17, %s114_s22  }
   0xa   : > { %p1299_p5 = por %p125_p2, %p124_p0  ;;  %p1303_p6 = por %p131_p4, %p130_p3 }
   0xb   : > { %p1008_p7 = scmp.ge.s32.totalorder %s1204_s18, 1  ;;  %p138_p8 = scmp.lt.s32.totalorder %s1204_s18, 3 }
   0xc   : > { %s1778_s25 = scalar_select %p1299_p5, 1, 0 }
   0xd   : > { %s1779_s26 = scalar_select %p1303_p6, 1, 0 }
   0xe   : > { %p1775_p9 = scmp.eq.s32.totalorder %s1282_s19, 0  ;;  %p1310_p10 = pnand %p1008_p7, %p138_p8 }
   0xf   : > { %s1206_s28 = smov [#allocation2]   ;;  %s1110_s7 = scalar_lea.hbm %s1773_s3, 8704 }
  0x10   : > { %s1780_s27 = scalar_select %p1310_p10, 1, 0 }
  0x11   : > { %s156_s29 = sshll.u32 %s1206_s28, 4  ;;  %p1036_p11 = pneg %p1310_p10  ;;  %s157_s29 = int_to_ptr.vmem [resolvable:$true] %s156_s29 }
  0x12   : > { %p1111_p13 = scmp.ne.s32.totalorder %s1773_s3, %s1110_s7  ;;  %p1117_p3 = scmp.lt.u32.totalorder %s1110_s7, %s1773_s3 }
  0x13   : > { %p1318_p12 = pnand %p1775_p9, %p1036_p11 }
  0x15   : > { %p1112_p0 = pneg %p1318_p12 }
  0x17   : > { %p1113_p1 = pnand %p1112_p0, %p1111_p13 }
  0x19   : > { %p1114_p2 = pneg %p1113_p1 }
  0x1b   : > { %p1119_p4 = pnand %p1117_p3, %p1114_p2 }
  0x1d   : > { %1122 = shalt.err (!%p1119_p4)
}
  0x1e   : > { %s1123_s12 = scalar_lea.vmem %s157_s29, 8704  ;;  %p1131_p9 = scmp.lt.s32.totalorder %s157_s29, %s157_s29 }
  0x1f   : > { %p1124_p7 = scmp.ne.s32.totalorder %s157_s29, %s1123_s12  ;;  %p1132_p6 = scmp.lt.s32.totalorder %s1123_s12, %s1123_s12 }
  0x21   : > { %p1126_p8 = pnand %p1124_p7, %p1112_p0  ;;  %p1133_p5 = por %p1132_p6, %p1131_p9 }
  0x23   : > { %p1127_p11 = pneg %p1126_p8 }
  0x25   : > { %p1134_p10 = pnand %p1133_p5, %p1127_p11 }
  0x27   : > { %1137 = shalt.err (!%p1134_p10)
}
  0x28   : > { %s1207_s13 = smov 256   ;;  %s1208_s14 = smov 16  }
  0x29   : > { %1039 = dma.hbm_to_vmem [thread:$0]  (!%p1318_p12), %s1773_s3, 8704, %s157_s29, [#allocation3], %s1207_s13, %s1207_s13, %s1208_s14  }
  0x2a   : > { %p1782_p13 = scmp.ne.s32.totalorder %s1780_s27, 0 }
  0x2b   : > { %p1783_p1 = scmp.eq.s32.totalorder (!%p1782_p13), %s1282_s19, 0 }
  0x2c   : > { %180 = sbr.rel (%p1782_p13) target bundleno = 790 (0x316), region = 36 }
  0x33   : > { %1183 = dma.done.wait (%p1783_p1), [#allocation3], 8704   ;;  %p1784_p0 = pmov %p1783_p1 }
  0x34   : > { %p206_p5 = scmp.lt.s32.totalorder %s1282_s19, 1  ;;  %v1209_v0 = vmov 0.0   ;;  %v1210_v1 = vmov 0   ;;  %vm247_vm0 = vcmask 1040384   ;;  %vm250_vm1 = vcmask 1041408   ;;  %v215_v7 = vld [vmem:[%s1772_s2 + $0x8] sm:$0xff] }
  0x35   : > { %1185 = vsyncadd (%p1784_p0), [#allocation3], 4294958592  ;;  %349 = vmatprep.mubr.f32.mxu0 %v1209_v0  ;;  %1108 = vset.pattern.permute.xlu0 %v1210_v1  ;;  %vm253_vm2 = vcmask 1042432   ;;  %vm256_vm3 = vcmask 1043456   ;;  %vm259_vm4 = vcmask 1044480   ;;  %v214_v15 = vld [vmem:[%s1772_s2] sm:$0xff]  ;;  %v372_v49 = vlaneseq }
  0x36   : > { %s207_s23 = scalar_select %p206_p5, %s1282_s19, 1  ;;  %1109 = vset.pattern.permute.xlu1 %v1210_v1  ;;  %908 = vmatprep.mubr.f32.mxu1 %v1209_v0  ;;  %vm262_vm5 = vcmask 1045504   ;;  %vm265_vm6 = vcmask 1046528   ;;  %v216_v27 = vld [vmem:[%s1772_s2 + $0x10] sm:$0xff]  ;;  %v211_v32 = vld [vmem:[%s1771_s1] sm:$0xff]  ;;  %vm278_vm7 = vcmask 64512  }
  0x37   : > { %275 = vperm.xlu0 %1108, %v215_v7   ;;  %v212_v34 = vld [vmem:[%s1771_s1 + $0x8] sm:$0xff]  ;;  %s1211_s20 = smov 17   ;;  %s1212_s22 = smov 16   ;;  %v1477_v50 = vand.u32 127, %v372_v49  ;;  %v416_v52 = vld [vmem:[#allocation2 + $0x40] sm:$0xff] }
  0x38   : > { %s1024_s28 = sshll.u32 %s207_s23, 4  ;;  %s1213_s23 = smov 127   ;;  %v366_v54 = vld [vmem:[#allocation2] sm:$0xff]  ;;  %v367_v55 = vld [vmem:[#allocation2 + $0x8] sm:$0xff] }
  0x39   : > { %s210_s30 = scalar_lea.vmem %s1770_s0, %s1024_s28  ;;  %s1214_s28 = smov 111   ;;  %vm374_vm8 = vcmp.lt.s32.totalorder %v1477_v50, 17  ;;  %v417_v56 = vld [vmem:[#allocation2 + $0x48] sm:$0xff]  ;;  %vm386_vm9 = vcmp.lt.s32.totalorder %v1477_v50, 16  ;;  %vm429_vm10 = vcmp.lt.s32.totalorder %v1477_v50, 127  ;;  %v218_v7 = vld [vmem:[%s1772_s2 + $0x20] sm:$0xff] }
  0x3a   : > { %v220_v2 = vld [vmem:[%s210_s30 + $0x8] sm:$0xff]  ;;  %v219_v3 = vld [vmem:[%s210_s30] sm:$0xff]  ;;  %s1215_s29 = smov 15   ;;  %s1216_s27 = smov 113   ;;  %vm471_vm11 = vcmp.lt.s32.totalorder %v1477_v50, 111  ;;  %vm398_vm12 = vcmp.lt.s32.totalorder %v1477_v50, 15 }
  0x3b   : > { %v224_v4 = vrot.slane %v220_v2, 3  ;;  %v228_v5 = vrot.slane %v220_v2, 7  ;;  %v232_v6 = vrot.slane %v220_v2, 2  ;;  %v236_v8 = vrot.slane %v220_v2, 6  ;;  %270 = vperm.xlu0 %1108, %v214_v15   ;;  %s1217_s30 = smov 1   ;;  %s1218_s5 = smov 112  }
  0x3c   : > { %v223_v9 = vrot.slane %v219_v3, 3  ;;  %v227_v10 = vrot.slane %v219_v3, 7  ;;  %v240_v11 = vrot.slane %v220_v2, 1  ;;  %v231_v13 = vrot.slane %v219_v3, 2  ;;  %s1219_s6 = smov 30   ;;  %s1220_s7 = smov 34  }
  0x3d   : > { %v249_v12 = vsel %vm247_vm0, %v220_v2, %v224_v4  ;;  %v235_v14 = vrot.slane %v219_v3, 6  ;;  %v244_v16 = vrot.slane %v220_v2, 5  ;;  %v239_v18 = vrot.slane %v219_v3, 1  ;;  %s1221_s8 = smov 33   ;;  %s1222_s9 = smov 95  }
  0x3e   : > { %v252_v17 = vsel %vm250_vm1, %v249_v12, %v228_v5  ;;  %v248_v19 = vsel %vm247_vm0, %v219_v3, %v223_v9  ;;  %v243_v21 = vrot.slane %v219_v3, 5  ;;  %s1223_s10 = smov 18   ;;  %s1224_s11 = smov 32   ;;  %vm443_vm13 = vcmp.lt.s32.totalorder %v1477_v50, 113 }
  0x3f   : > { %v255_v20 = vsel %vm253_vm2, %v252_v17, %v232_v6  ;;  %v251_v22 = vsel %vm250_vm1, %v248_v19, %v227_v10  ;;  %486 = vperm.xlu0 %1108, %v216_v27   ;;  %s1225_s12 = smov 14   ;;  %s1226_s13 = smov 31   ;;  %v380_v6 = vld [vmem:[#allocation2 + $0x10] sm:$0xff]  ;;  %vm410_vm14 = vcmp.lt.s32.totalorder %v1477_v50, 1  ;;  %vm457_vm15 = vcmp.lt.s32.totalorder %v1477_v50, 112 }
  0x40   : > { %v258_v23 = vsel %vm256_vm3, %v255_v20, %v236_v8  ;;  %v254_v24 = vsel %vm253_vm2, %v251_v22, %v231_v13  ;;  %s1227_s14 = smov 2   ;;  %v381_v8 = vld [vmem:[#allocation2 + $0x18] sm:$0xff]  ;;  %v423_v10 = vld [vmem:[#allocation2 + $0x50] sm:$0xff]  ;;  %v465_v20 = vld [vmem:[#allocation2 + $0x80] sm:$0xff]  ;;  %vm500_vm0 = vcmp.lt.s32.totalorder %v1477_v50, 34  ;;  %vm548_vm1 = vcmp.lt.s32.totalorder %v1477_v50, 30 }
  0x41   : > { %v261_v25 = vsel %vm259_vm4, %v258_v23, %v240_v11  ;;  %v257_v26 = vsel %vm256_vm3, %v254_v24, %v235_v14  ;;  %v424_v11 = vld [vmem:[#allocation2 + $0x58] sm:$0xff]  ;;  %vm512_vm2 = vcmp.lt.s32.totalorder %v1477_v50, 33  ;;  %vm562_vm3 = vcmp.lt.s32.totalorder %v1477_v50, 18  ;;  %p1785_p9 = scmp.ne.s32.totalorder %s1778_s25, 0 }
  0x42   : > { %v264_v28 = vsel %vm262_vm5, %v261_v25, %v244_v16  ;;  %v260_v29 = vsel %vm259_vm4, %v257_v26, %v239_v18  ;;  %vm615_vm4 = vcmp.lt.s32.totalorder %v1477_v50, 14 }
  0x43   : > { %v1368_v30 = vsel %vm265_vm6, %v264_v28, %v220_v2  ;;  %v263_v31 = vsel %vm262_vm5, %v260_v29, %v243_v21  ;;  %v466_v21 = vld [vmem:[#allocation2 + $0x88] sm:$0xff]  ;;  %vm524_vm5 = vcmp.lt.s32.totalorder %v1477_v50, 32 }
  0x44   : > { %285 = vmatprep.subr.mxu0 %v1368_v30  ;;  %v1374_v33 = vsel %vm265_vm6, %v263_v31, %v219_v3  ;;  %v217_v31 = vld [vmem:[%s1772_s2 + $0x18] sm:$0xff]  ;;  %vm536_vm6 = vcmp.lt.s32.totalorder %v1477_v50, 31 }
  0x45   : > { %286 = vmatpush1.msra.mxu0 %v1374_v33 }
  0x46   : > { %1016 = vmatmul.mubr.msk.f32.vlgmr.msra.gmra.mrb[0].mxu0 %vm278_vm7, %v211_v32 }
  0x47   : > { %355 = vmatprep.mubr.f32.mxu0 %v1209_v0 }
  0x4a   : > { %1017 = vmatmul.mubr.msk.f32.gmra.mrb[2].mxu0 %vm278_vm7, %v212_v34  ;;  %vm629_vm7 = vcmp.lt.s32.totalorder %v1477_v50, 2 }
  0xb6   : > { %v276_v35 = vpop.permute.xlu0 %275 }
  0xba   : > { %v271_v36 = vpop.permute.xlu0 %270 }
  0xbe   : > { %v1479_v51 = vpop.permute.xlu0 %486 }
 0x119   : > { %v351_v37 = vpop.f32.mrb[0].mxu0 }
 0x11a   : > { %v352_v38 = vadd.f32 %v351_v37, %v271_v36  ;;  %v353_v39 = vpop.f32.mrb[1].mxu0 }
 0x11b   : > { %v354_v40 = vadd.f32 %v353_v39, %v271_v36 }
 0x11c   : > { %v1380_v41 = vmax.f32 %v352_v38, 0.0 }
 0x11d   : > { %v1382_v42 = vmax.f32 %v354_v40, 0.0  ;;  %v357_v43 = vpop.f32.mrb[2].mxu0  ;;  %v392_v40 = vld [vmem:[#allocation2 + $0x20] sm:$0xff] }
 0x11e   : > { %v359_v44 = vpop.f32.mrb[3].mxu0  ;;  %368 = vrot.lane.b32.xlu0 %v1380_v41, %s1211_s20  ;;  %v358_v45 = vadd.f32 %v357_v43, %v276_v35  ;;  %v418_v62 = vmul.f32 %v416_v52, %v1380_v41  ;;  %v437_v43 = vld [vmem:[#allocation2 + $0x60] sm:$0xff] }
 0x11f   : > { %370 = vrot.lane.b32.xlu1 %v1382_v42, %s1211_s20  ;;  %v360_v47 = vadd.f32 %v359_v44, %v276_v35  ;;  %v419_v63 = vmul.f32 %v417_v56, %v1382_v42  ;;  %v438_v44 = vld [vmem:[#allocation2 + $0x68] sm:$0xff] }
 0x120   : > { %v1416_v46 = vmax.f32 %v358_v45, 0.0 }
 0x121   : > { %v1423_v48 = vmax.f32 %v360_v47, 0.0 }
 0x122   : > { %382 = vrot.lane.b32.xlu0 %v1380_v41, %s1212_s22 }
 0x123   : > { %384 = vrot.lane.b32.xlu1 %v1382_v42, %s1212_s22 }
 0x126   : > { %425 = vrot.lane.b32.xlu0 %v1380_v41, %s1213_s23 }
 0x127   : > { %427 = vrot.lane.b32.xlu1 %v1382_v42, %s1213_s23 }
 0x12a   : > { %467 = vrot.lane.b32.xlu0 %v1380_v41, %s1214_s28 }
 0x12b   : > { %469 = vrot.lane.b32.xlu1 %v1382_v42, %s1214_s28 }
 0x12e   : > { %394 = vrot.lane.b32.xlu0 %v1380_v41, %s1215_s29 }
 0x12f   : > { %396 = vrot.lane.b32.xlu1 %v1382_v42, %s1215_s29 }
 0x132   : > { %439 = vrot.lane.b32.xlu0 %v1380_v41, %s1216_s27 }
 0x133   : > { %441 = vrot.lane.b32.xlu1 %v1382_v42, %s1216_s27 }
 0x136   : > { %406 = vrot.lane.b32.xlu0 %v1380_v41, %s1217_s30 }
 0x137   : > { %408 = vrot.lane.b32.xlu1 %v1382_v42, %s1217_s30 }
 0x13a   : > { %453 = vrot.lane.b32.xlu0 %v1380_v41, %s1218_s5  ;;  %v393_v41 = vld [vmem:[#allocation2 + $0x28] sm:$0xff] }
 0x13b   : > { %455 = vrot.lane.b32.xlu1 %v1382_v42, %s1218_s5 }
 0x13e   : > { %544 = vrot.lane.b32.xlu0 %v1416_v46, %s1219_s6 }
 0x13f   : > { %496 = vrot.lane.b32.xlu1 %v1416_v46, %s1220_s7 }
 0x142   : > { %508 = vrot.lane.b32.xlu0 %v1416_v46, %s1221_s8 }
 0x143   : > { %795 = vrot.lane.b32.xlu1 %v1416_v46, %s1222_s9 }
 0x146   : > { %558 = vrot.lane.b32.xlu0 %v1416_v46, %s1223_s10 }
 0x147   : > { %498 = vrot.lane.b32.xlu1 %v1423_v48, %s1220_s7 }
 0x14a   : > { %598 = vrot.lane.b32.xlu0 %v1416_v46, %s1215_s29 }
 0x14b   : > { %546 = vrot.lane.b32.xlu1 %v1423_v48, %s1219_s6 }
 0x14e   : > { %520 = vrot.lane.b32.xlu0 %v1416_v46, %s1224_s11 }
 0x14f   : > { %510 = vrot.lane.b32.xlu1 %v1423_v48, %s1221_s8 }
 0x152   : > { %572 = vrot.lane.b32.xlu0 %v1416_v46, %s1211_s20 }
 0x153   : > { %560 = vrot.lane.b32.xlu1 %v1423_v48, %s1223_s10 }
 0x156   : > { %611 = vrot.lane.b32.xlu0 %v1416_v46, %s1225_s12 }
 0x157   : > { %600 = vrot.lane.b32.xlu1 %v1423_v48, %s1215_s29  ;;  %s1229_s29 = smov 98  }
 0x15a   : > { %532 = vrot.lane.b32.xlu0 %v1416_v46, %s1226_s13 }
 0x15b   : > { %522 = vrot.lane.b32.xlu1 %v1423_v48, %s1224_s11  ;;  %s203_s11 = sand.u32 1, %s1196_s16  }
 0x15e   : > { %585 = vrot.lane.b32.xlu0 %v1416_v46, %s1212_s22 }
 0x15f   : > { %574 = vrot.lane.b32.xlu1 %v1423_v48, %s1211_s20  ;;  %s1228_s20 = smov 126  }
 0x162   : > { %625 = vrot.lane.b32.xlu0 %v1416_v46, %s1227_s14 }
 0x163   : > { %613 = vrot.lane.b32.xlu1 %v1423_v48, %s1225_s12  ;;  %s1013_s12 = sshll.u32 %s203_s11, 4 }
 0x166   : > { %659 = vrot.lane.b32.xlu0 %v1416_v46, %s1213_s23 }
 0x167   : > { %534 = vrot.lane.b32.xlu1 %v1423_v48, %s1226_s13  ;;  %s1025_s13 = sshll.u32 %s1282_s19, 8 }
 0x16a   : > { %700 = vrot.lane.b32.xlu0 %v1416_v46, %s1216_s27 }
 0x16b   : > { %587 = vrot.lane.b32.xlu1 %v1423_v48, %s1212_s22  ;;  %s1230_s22 = smov 114  }
 0x16e   : > { %639 = vrot.lane.b32.xlu0 %v1416_v46, %s1217_s30 }
 0x16f   : > { %627 = vrot.lane.b32.xlu1 %v1423_v48, %s1227_s14  ;;  %s205_s14 = scalar_lea.vmem [#allocation5], %s1013_s12 }
 0x172   : > { %672 = vrot.lane.b32.xlu0 %v1416_v46, %s1228_s20 }
 0x173   : > { %661 = vrot.lane.b32.xlu1 %v1423_v48, %s1213_s23  ;;  %s1231_s23 = smov 97  }
 0x176   : > { %713 = vrot.lane.b32.xlu0 %v1416_v46, %s1218_s5 }
 0x177   : > { %702 = vrot.lane.b32.xlu1 %v1423_v48, %s1216_s27  ;;  %s1232_s27 = smov 94  }
 0x17a   : > { %753 = vrot.lane.b32.xlu0 %v1416_v46, %s1229_s29 }
 0x17b   : > { %641 = vrot.lane.b32.xlu1 %v1423_v48, %s1217_s30  ;;  %s1233_s30 = smov 110  }
 0x17e   : > { %686 = vrot.lane.b32.xlu0 %v1416_v46, %s1230_s22 }
 0x17f   : > { %674 = vrot.lane.b32.xlu1 %v1423_v48, %s1228_s20  ;;  %s936_s20 = sshll.u32 %s205_s14, 4  ;;  %s1730_s20 = int_to_ptr.vmem [resolvable:$true] %s936_s20 }
 0x180   : > { %s1138_s19 = scalar_lea.vmem %s1730_s20, 256 }
 0x181   : > { %p1139_p6 = scmp.ne.s32.totalorder %s1730_s20, %s1138_s19 }
 0x182   : > { %726 = vrot.lane.b32.xlu0 %v1416_v46, %s1214_s28 }
 0x183   : > { %715 = vrot.lane.b32.xlu1 %v1423_v48, %s1218_s5  ;;  %s1234_s5 = smov 96   ;;  %p1140_p10 = pnand %p1139_p6, %p1785_p9 }
 0x185   : > { %p1141_p12 = pneg %p1140_p10 }
 0x186   : > { %767 = vrot.lane.b32.xlu0 %v1416_v46, %s1231_s23 }
 0x187   : > { %755 = vrot.lane.b32.xlu1 %v1423_v48, %s1229_s29 }
 0x18a   : > { %809 = vrot.lane.b32.xlu0 %v1416_v46, %s1232_s27 }
 0x18b   : > { %688 = vrot.lane.b32.xlu1 %v1423_v48, %s1230_s22 }
 0x18e   : > { %739 = vrot.lane.b32.xlu0 %v1416_v46, %s1233_s30 }
 0x18f   : > { %728 = vrot.lane.b32.xlu1 %v1423_v48, %s1214_s28 }
 0x190   : > { %v369_v53 = vpop.permute.xlu0 %368 }
 0x191   : > { %v371_v57 = vpop.permute.xlu1 %370 }
 0x192   : > { %v375_v58 = vsel %vm374_vm8, %v369_v53, %v371_v57  ;;  %v376_v59 = vsel %vm374_vm8, %v371_v57, %v369_v53  ;;  %781 = vrot.lane.b32.xlu0 %v1416_v46, %s1234_s5 }
 0x193   : > { %v377_v60 = vmul.f32 %v376_v59, %v366_v54  ;;  %v378_v61 = vmul.f32 %v375_v58, %v367_v55  ;;  %769 = vrot.lane.b32.xlu1 %v1423_v48, %s1231_s23  ;;  %s1728_s23 = scalar_lea.hbm %s1774_s4, %s1025_s13 }
 0x194   : > { %v383_v0 = vpop.permute.xlu0 %382 }
 0x195   : > { %v420_v1 = vadd.f32 %v418_v62, %v377_v60  ;;  %v421_v2 = vadd.f32 %v419_v63, %v378_v61  ;;  %v385_v3 = vpop.permute.xlu1 %384  ;;  %v404_v63 = vld [vmem:[#allocation2 + $0x30] sm:$0xff] }
 0x196   : > { %v387_v4 = vsel %vm386_vm9, %v383_v0, %v385_v3  ;;  %v388_v5 = vsel %vm386_vm9, %v385_v3, %v383_v0  ;;  %797 = vrot.lane.b32.xlu0 %v1423_v48, %s1222_s9  ;;  %v451_v3 = vld [vmem:[#allocation2 + $0x70] sm:$0xff] }
 0x197   : > { %811 = vrot.lane.b32.xlu1 %v1423_v48, %s1232_s27  ;;  %v389_v15 = vmul.f32 %v388_v5, %v380_v6  ;;  %v390_v16 = vmul.f32 %v387_v4, %v381_v8  ;;  %v452_v4 = vld [vmem:[#allocation2 + $0x78] sm:$0xff]  ;;  %s922_s27 = scalar_lea.sflag [#allocation4], %s203_s11 }
 0x198   : > { %v426_v9 = vpop.permute.xlu0 %425 }
 0x199   : > { %v428_v12 = vpop.permute.xlu1 %427 }
 0x19a   : > { %v430_v13 = vsel %vm429_vm10, %v426_v9, %v428_v12  ;;  %v431_v14 = vsel %vm429_vm10, %v428_v12, %v426_v9  ;;  %837 = vperm.xlu0 %1108, %v218_v7  }
 0x19b   : > { %v432_v17 = vmul.f32 %v430_v13, %v423_v10  ;;  %v433_v18 = vmul.f32 %v431_v14, %v424_v11  ;;  %741 = vrot.lane.b32.xlu1 %v1423_v48, %s1233_s30  ;;  %s1235_s30 = smov [#allocation5]  }
 0x19c   : > { %v468_v19 = vpop.permute.xlu0 %467 }
 0x19d   : > { %v434_v22 = vadd.f32 %v432_v17, %v389_v15  ;;  %v435_v23 = vadd.f32 %v433_v18, %v390_v16  ;;  %v470_v24 = vpop.permute.xlu1 %469 }
 0x19e   : > { %v472_v25 = vsel %vm471_vm11, %v468_v19, %v470_v24  ;;  %v473_v26 = vsel %vm471_vm11, %v470_v24, %v468_v19 }
 0x19f   : > { %v474_v27 = vmul.f32 %v472_v25, %v465_v20  ;;  %v475_v28 = vmul.f32 %v473_v26, %v466_v21  ;;  %783 = vrot.lane.b32.xlu1 %v1423_v48, %s1234_s5  ;;  %v494_v26 = vld [vmem:[#allocation2 + $0x90] sm:$0xff]  ;;  %s1142_s5 = sshll.u32 %s1235_s30, 4  ;;  %s1143_s5 = int_to_ptr.vmem [resolvable:$false] %s1142_s5 }
 0x1a0   : > { %v395_v29 = vpop.permute.xlu0 %394  ;;  %s1144_s28 = scalar_lea.vmem %s1143_s5, 512  ;;  %p1145_p2 = scmp.lt.s32.totalorder %s1730_s20, %s1143_s5 }
 0x1a1   : > { %v476_v32 = vadd.f32 %v474_v27, %v420_v1  ;;  %v477_v34 = vadd.f32 %v475_v28, %v421_v2  ;;  %v397_v35 = vpop.permute.xlu1 %396  ;;  %v405_v1 = vld [vmem:[#allocation2 + $0x38] sm:$0xff]  ;;  %p1146_p3 = scmp.lt.s32.totalorder %s1144_s28, %s1138_s19 }
 0x1a2   : > { %v399_v36 = vsel %vm398_vm12, %v395_v29, %v397_v35  ;;  %v400_v37 = vsel %vm398_vm12, %v397_v35, %v395_v29  ;;  %v495_v27 = vld [vmem:[#allocation2 + $0x98] sm:$0xff]  ;;  %v542_v29 = vld [vmem:[#allocation2 + $0xd0] sm:$0xff] }
 0x1a3   : > { %v478_v38 = vadd.f32 %v476_v32, %v434_v22  ;;  %v479_v39 = vadd.f32 %v477_v34, %v435_v23  ;;  %828 = vperm.xlu1 %1109, %v217_v31   ;;  %v401_v52 = vmul.f32 %v400_v37, %v392_v40  ;;  %v402_v53 = vmul.f32 %v399_v36, %v393_v41  ;;  %v543_v31 = vld [vmem:[#allocation2 + $0xd8] sm:$0xff]  ;;  %p1147_p4 = por %p1146_p3, %p1145_p2 }
 0x1a4   : > { %v440_v42 = vpop.permute.xlu0 %439 }
 0x1a5   : > { %v442_v45 = vpop.permute.xlu1 %441  ;;  %p1148_p7 = pnand %p1147_p4, %p1141_p12 }
 0x1a6   : > { %v444_v47 = vsel %vm443_vm13, %v440_v42, %v442_v45  ;;  %v445_v49 = vsel %vm443_vm13, %v442_v45, %v440_v42  ;;  %v506_v45 = vld [vmem:[#allocation2 + $0xa0] sm:$0xff] }
 0x1a7   : > { %v446_v54 = vmul.f32 %v444_v47, %v437_v43  ;;  %v447_v55 = vmul.f32 %v445_v49, %v438_v44  ;;  %v507_v47 = vld [vmem:[#allocation2 + $0xa8] sm:$0xff] }
 0x1a8   : > { %v407_v56 = vpop.permute.xlu0 %406 }
 0x1a9   : > { %v448_v57 = vadd.f32 %v446_v54, %v401_v52  ;;  %v449_v58 = vadd.f32 %v447_v55, %v402_v53  ;;  %v409_v59 = vpop.permute.xlu1 %408  ;;  %v556_v52 = vld [vmem:[#allocation2 + $0xe0] sm:$0xff]  ;;  %v557_v53 = vld [vmem:[#allocation2 + $0xe8] sm:$0xff] }
 0x1aa   : > { %v411_v60 = vsel %vm410_vm14, %v407_v56, %v409_v59  ;;  %v412_v61 = vsel %vm410_vm14, %v409_v59, %v407_v56 }
 0x1ab   : > { %v480_v62 = vadd.f32 %v478_v38, %v448_v57  ;;  %v481_v0 = vadd.f32 %v479_v39, %v449_v58  ;;  %v413_v8 = vmul.f32 %v412_v61, %v404_v63  ;;  %v414_v9 = vmul.f32 %v411_v60, %v405_v1  ;;  %v597_v63 = vld [vmem:[#allocation2 + $0x118] sm:$0xff] }
 0x1ac   : > { %v454_v2 = vpop.permute.xlu0 %453 }
 0x1ad   : > { %v456_v5 = vpop.permute.xlu1 %455 }
 0x1ae   : > { %v458_v6 = vsel %vm457_vm15, %v454_v2, %v456_v5  ;;  %v459_v7 = vsel %vm457_vm15, %v456_v5, %v454_v2 }
 0x1af   : > { %v460_v10 = vmul.f32 %v458_v6, %v451_v3  ;;  %v461_v11 = vmul.f32 %v459_v7, %v452_v4 }
 0x1b0   : > { %v545_v12 = vpop.permute.xlu0 %544 }
 0x1b1   : > { %v462_v13 = vadd.f32 %v460_v10, %v413_v8  ;;  %v463_v14 = vadd.f32 %v461_v11, %v414_v9  ;;  %v497_v15 = vpop.permute.xlu1 %496 }
 0x1b3   : > { %v483_v16 = vadd.f32 %v481_v0, %v463_v14  ;;  %v482_v17 = vadd.f32 %v480_v62, %v462_v13  ;;  %v596_v62 = vld [vmem:[#allocation2 + $0x110] sm:$0xff] }
 0x1b4   : > { %v509_v18 = vpop.permute.xlu0 %508 }
 0x1b5   : > { %v1544_v19 = vpop.permute.xlu1 %795  ;;  %v1547_v20 = vadd.f32 %v1479_v51, %v483_v16  ;;  %v1550_v21 = vadd.f32 %v1479_v51, %v482_v17 }
 0x1b8   : > { %v559_v22 = vpop.permute.xlu0 %558 }
 0x1b9   : > { %v499_v23 = vpop.permute.xlu1 %498 }
 0x1ba   : > { %v501_v24 = vsel %vm500_vm0, %v497_v15, %v499_v23  ;;  %v502_v25 = vsel %vm500_vm0, %v499_v23, %v497_v15  ;;  %vm813_vm0 = vcmp.lt.s32.totalorder %v1477_v50, 94 }
 0x1bb   : > { %v503_v51 = vmul.f32 %v502_v25, %v494_v26  ;;  %v504_v36 = vmul.f32 %v501_v24, %v495_v27 }
 0x1bc   : > { %v599_v28 = vpop.permute.xlu0 %598 }
 0x1bd   : > { %v547_v32 = vpop.permute.xlu1 %546 }
 0x1be   : > { %v549_v34 = vsel %vm548_vm1, %v545_v12, %v547_v32  ;;  %v550_v35 = vsel %vm548_vm1, %v547_v32, %v545_v12  ;;  %vm676_vm1 = vcmp.lt.s32.totalorder %v1477_v50, 126 }
 0x1bf   : > { %v551_v37 = vmul.f32 %v550_v35, %v542_v29  ;;  %v552_v38 = vmul.f32 %v549_v34, %v543_v31 }
 0x1c0   : > { %v1555_v39 = vpop.permute.xlu0 %520 }
 0x1c1   : > { %v553_v40 = vadd.f32 %v551_v37, %v503_v51  ;;  %v554_v41 = vadd.f32 %v552_v38, %v504_v36  ;;  %v511_v42 = vpop.permute.xlu1 %510  ;;  %v650_v36 = vld [vmem:[#allocation2 + $0x150] sm:$0xff]  ;;  %v571_v38 = vld [vmem:[#allocation2 + $0xf8] sm:$0xff] }
 0x1c2   : > { %v513_v43 = vsel %vm512_vm2, %v509_v18, %v511_v42  ;;  %v514_v44 = vsel %vm512_vm2, %v511_v42, %v509_v18  ;;  %v570_v37 = vld [vmem:[#allocation2 + $0xf0] sm:$0xff]  ;;  %v651_v42 = vld [vmem:[#allocation2 + $0x158] sm:$0xff] }
 0x1c3   : > { %v515_v57 = vmul.f32 %v514_v44, %v506_v45  ;;  %v516_v58 = vmul.f32 %v513_v43, %v507_v47  ;;  %v609_v43 = vld [vmem:[#allocation2 + $0x120] sm:$0xff]  ;;  %v610_v44 = vld [vmem:[#allocation2 + $0x128] sm:$0xff] }
 0x1c4   : > { %v573_v49 = vpop.permute.xlu0 %572 }
 0x1c5   : > { %v561_v54 = vpop.permute.xlu1 %560 }
 0x1c6   : > { %v563_v55 = vsel %vm562_vm3, %v559_v22, %v561_v54  ;;  %v564_v56 = vsel %vm562_vm3, %v561_v54, %v559_v22 }
 0x1c7   : > { %v565_v59 = vmul.f32 %v564_v56, %v556_v52  ;;  %v566_v60 = vmul.f32 %v563_v55, %v557_v53  ;;  %v518_v52 = vld [vmem:[#allocation2 + $0xb0] sm:$0xff]  ;;  %v519_v53 = vld [vmem:[#allocation2 + $0xb8] sm:$0xff]  ;;  %v652_v56 = vmul.f32 %v650_v36, %v1416_v46  ;;  %v657_v46 = vld [vmem:[#allocation2 + $0x160] sm:$0xff] }
 0x1c8   : > { %v612_v61 = vpop.permute.xlu0 %611  ;;  %v699_v36 = vld [vmem:[#allocation2 + $0x198] sm:$0xff] }
 0x1c9   : > { %v1558_v0 = vadd.f32 %v565_v59, %v515_v57  ;;  %v1560_v1 = vadd.f32 %v566_v60, %v516_v58  ;;  %v601_v2 = vpop.permute.xlu1 %600 }
 0x1ca   : > { %v602_v3 = vsel %vm398_vm12, %v599_v28, %v601_v2  ;;  %v603_v4 = vsel %vm398_vm12, %v601_v2, %v599_v28  ;;  %vm771_vm12 = vcmp.lt.s32.totalorder %v1477_v50, 97 }
 0x1cb   : > { %v604_v5 = vmul.f32 %v603_v4, %v596_v62  ;;  %v605_v6 = vmul.f32 %v602_v3, %v597_v63 }
 0x1cc   : > { %v1566_v7 = vpop.permute.xlu0 %532 }
 0x1cd   : > { %v606_v8 = vadd.f32 %v604_v5, %v553_v40  ;;  %v607_v9 = vadd.f32 %v605_v6, %v554_v41  ;;  %v523_v10 = vpop.permute.xlu1 %522 }
 0x1ce   : > { %v525_v54 = vsel %vm524_vm5, %v1555_v39, %v523_v10  ;;  %v526_v55 = vsel %vm524_vm5, %v523_v10, %v1555_v39  ;;  %v658_v39 = vld [vmem:[#allocation2 + $0x168] sm:$0xff] }
 0x1cf   : > { %v527_v63 = vmul.f32 %v526_v55, %v518_v52  ;;  %v528_v2 = vmul.f32 %v525_v54, %v519_v53  ;;  %v654_v4 = vadd.f32 %v652_v56, %v606_v8  ;;  %v765_v55 = vld [vmem:[#allocation2 + $0x1e0] sm:$0xff]  ;;  %v766_v56 = vld [vmem:[#allocation2 + $0x1e8] sm:$0xff] }
 0x1d0   : > { %v1568_v11 = vpop.permute.xlu0 %585 }
 0x1d1   : > { %v575_v12 = vpop.permute.xlu1 %574 }
 0x1d2   : > { %v576_v40 = vsel %vm374_vm8, %v573_v49, %v575_v12  ;;  %v577_v41 = vsel %vm374_vm8, %v575_v12, %v573_v49  ;;  %v653_v49 = vmul.f32 %v651_v42, %v1423_v48  ;;  %vm757_vm8 = vcmp.lt.s32.totalorder %v1477_v50, 98 }
 0x1d3   : > { %v578_v58 = vmul.f32 %v577_v41, %v570_v37  ;;  %v579_v59 = vmul.f32 %v576_v40, %v571_v38 }
 0x1d4   : > { %v1570_v13 = vpop.permute.xlu0 %625  ;;  %v655_v5 = vadd.f32 %v653_v49, %v607_v9  ;;  %v711_v9 = vld [vmem:[#allocation2 + $0x1a0] sm:$0xff] }
 0x1d5   : > { %v614_v14 = vpop.permute.xlu1 %613  ;;  %v1616_v10 = vadd.f32 %v578_v58, %v527_v63  ;;  %v1618_v12 = vadd.f32 %v579_v59, %v528_v2  ;;  %v807_v63 = vld [vmem:[#allocation2 + $0x210] sm:$0xff]  ;;  %v624_v2 = vld [vmem:[#allocation2 + $0x138] sm:$0xff] }
 0x1d6   : > { %v616_v45 = vsel %vm615_vm4, %v612_v61, %v614_v14  ;;  %v617_v47 = vsel %vm615_vm4, %v614_v14, %v612_v61  ;;  %v698_v14 = vld [vmem:[#allocation2 + $0x190] sm:$0xff] }
 0x1d7   : > { %v618_v60 = vmul.f32 %v617_v47, %v609_v43  ;;  %v619_v62 = vmul.f32 %v616_v45, %v610_v44  ;;  %v751_v44 = vld [vmem:[#allocation2 + $0x1d0] sm:$0xff]  ;;  %v752_v45 = vld [vmem:[#allocation2 + $0x1d8] sm:$0xff] }
 0x1d8   : > { %v660_v15 = vpop.permute.xlu0 %659 }
 0x1d9   : > { %v1572_v16 = vpop.permute.xlu1 %534  ;;  %v621_v8 = vadd.f32 %v619_v62, %v1560_v1 }
 0x1da   : > { %v537_v1 = vsel %vm536_vm6, %v1566_v7, %v1572_v16 }
 0x1dc   : > { %v701_v17 = vpop.permute.xlu0 %700 }
 0x1dd   : > { %v1574_v18 = vpop.permute.xlu1 %587 }
 0x1de   : > { %v589_v58 = vsel %vm386_vm9, %v1568_v11, %v1574_v18 }
 0x1e0   : > { %v1576_v22 = vpop.permute.xlu0 %639 }
 0x1e1   : > { %v1578_v23 = vpop.permute.xlu1 %627 }
 0x1e2   : > { %v630_v49 = vsel %vm629_vm7, %v1570_v13, %v1578_v23 }
 0x1e4   : > { %v1580_v24 = vpop.permute.xlu0 %672 }
 0x1e5   : > { %v662_v25 = vpop.permute.xlu1 %661 }
 0x1e6   : > { %v663_v3 = vsel %vm429_vm10, %v660_v15, %v662_v25  ;;  %v664_v48 = vsel %vm429_vm10, %v662_v25, %v660_v15  ;;  %v620_v15 = vadd.f32 %v618_v60, %v1558_v0  ;;  %v712_v25 = vld [vmem:[#allocation2 + $0x1a8] sm:$0xff]  ;;  %vm690_vm10 = vcmp.lt.s32.totalorder %v1477_v50, 114 }
 0x1e7   : > { %v665_v42 = vmul.f32 %v663_v3, %v657_v46  ;;  %v666_v43 = vmul.f32 %v664_v48, %v658_v39  ;;  %v631_v60 = vsel %vm629_vm7, %v1578_v23, %v1570_v13  ;;  %v530_v23 = vld [vmem:[#allocation2 + $0xc0] sm:$0xff] }
 0x1e8   : > { %v714_v26 = vpop.permute.xlu0 %713 }
 0x1e9   : > { %v703_v27 = vpop.permute.xlu1 %702  ;;  %v667_v62 = vadd.f32 %v665_v42, %v620_v15  ;;  %v531_v15 = vld [vmem:[#allocation2 + $0xc8] sm:$0xff] }
 0x1ea   : > { %v704_v37 = vsel %vm443_vm13, %v701_v17, %v703_v27  ;;  %v705_v38 = vsel %vm443_vm13, %v703_v27, %v701_v17  ;;  %vm785_vm13 = vcmp.lt.s32.totalorder %v1477_v50, 96 }
 0x1eb   : > { %v706_v27 = vmul.f32 %v704_v37, %v698_v14 }
 0x1ec   : > { %v1582_v28 = vpop.permute.xlu0 %753 }
 0x1ed   : > { %v1584_v29 = vpop.permute.xlu1 %641  ;;  %v708_v46 = vadd.f32 %v706_v27, %v654_v4 }
 0x1f0   : > { %v1588_v32 = vpop.permute.xlu0 %686 }
 0x1f1   : > { %v1586_v31 = vpop.permute.xlu1 %674 }
 0x1f4   : > { %v1591_v35 = vpop.permute.xlu0 %726 }
 0x1f5   : > { %v716_v34 = vpop.permute.xlu1 %715 }
 0x1f6   : > { %v717_v40 = vsel %vm457_vm15, %v714_v26, %v716_v34  ;;  %v718_v41 = vsel %vm457_vm15, %v716_v34, %v714_v26  ;;  %v538_v26 = vsel %vm536_vm6, %v1572_v16, %v1566_v7  ;;  %v707_v34 = vmul.f32 %v705_v38, %v699_v36 }
 0x1f7   : > { %v719_v53 = vmul.f32 %v717_v40, %v711_v9  ;;  %v720_v54 = vmul.f32 %v718_v41, %v712_v25  ;;  %v590_v7 = vsel %vm386_vm9, %v1574_v18, %v1568_v11  ;;  %v808_v11 = vld [vmem:[#allocation2 + $0x218] sm:$0xff]  ;;  %v623_v18 = vld [vmem:[#allocation2 + $0x130] sm:$0xff]  ;;  %vm743_vm9 = vcmp.lt.s32.totalorder %v1477_v50, 110  ;;  %v583_v40 = vld [vmem:[#allocation2 + $0x100] sm:$0xff] }
 0x1f8   : > { %v768_v61 = vpop.permute.xlu0 %767  ;;  %v709_v39 = vadd.f32 %v707_v34, %v655_v5  ;;  %v584_v41 = vld [vmem:[#allocation2 + $0x108] sm:$0xff]  ;;  %v632_v42 = vmul.f32 %v631_v60, %v623_v18 }
 0x1f9   : > { %v756_v51 = vpop.permute.xlu1 %755  ;;  %v721_v36 = vadd.f32 %v719_v53, %v667_v62 }
 0x1fa   : > { %v758_v17 = vsel %vm757_vm8, %v1582_v28, %v756_v51  ;;  %v759_v0 = vsel %vm757_vm8, %v756_v51, %v1582_v28 }
 0x1fb   : > { %v760_v16 = vmul.f32 %v758_v17, %v751_v44  ;;  %v761_v59 = vmul.f32 %v759_v0, %v752_v45  ;;  %v677_v44 = vsel %vm676_vm1, %v1580_v24, %v1586_v31  ;;  %v678_v45 = vsel %vm676_vm1, %v1586_v31, %v1580_v24  ;;  %v670_v17 = vld [vmem:[#allocation2 + $0x170] sm:$0xff]  ;;  %v671_v0 = vld [vmem:[#allocation2 + $0x178] sm:$0xff] }
 0x1fc   : > { %v810_v47 = vpop.permute.xlu0 %809  ;;  %v644_v24 = vsel %vm410_vm14, %v1584_v29, %v1576_v22  ;;  %v591_v31 = vmul.f32 %v590_v7, %v583_v40  ;;  %v679_v60 = vmul.f32 %v677_v44, %v670_v17  ;;  %v680_v62 = vmul.f32 %v678_v45, %v671_v0 }
 0x1fd   : > { %v1601_v57 = vpop.permute.xlu1 %688  ;;  %v763_v9 = vadd.f32 %v761_v59, %v709_v39 }
 0x1fe   : > { %v691_v39 = vsel %vm690_vm10, %v1588_v32, %v1601_v57 }
 0x200   : > { %v740_v25 = vpop.permute.xlu0 %739 }
 0x201   : > { %v1614_v6 = vpop.permute.xlu1 %728 }
 0x204   : > { %v782_v18 = vpop.permute.xlu0 %781 }
 0x205   : > { %v770_v52 = vpop.permute.xlu1 %769 }
 0x206   : > { %v772_v28 = vsel %vm771_vm12, %v768_v61, %v770_v52  ;;  %v773_v51 = vsel %vm771_vm12, %v770_v52, %v768_v61  ;;  %v668_v61 = vadd.f32 %v666_v43, %v621_v8  ;;  %v762_v8 = vadd.f32 %v760_v16, %v708_v46  ;;  %v685_v46 = vld [vmem:[#allocation2 + $0x188] sm:$0xff] }
 0x207   : > { %v774_v3 = vmul.f32 %v772_v28, %v765_v55  ;;  %v775_v48 = vmul.f32 %v773_v51, %v766_v56  ;;  %v633_v43 = vmul.f32 %v630_v49, %v624_v2  ;;  %v540_v55 = vmul.f32 %v537_v1, %v531_v15  ;;  %v637_v56 = vld [vmem:[#allocation2 + $0x140] sm:$0xff]  ;;  %v638_v28 = vld [vmem:[#allocation2 + $0x148] sm:$0xff]  ;;  %v725_v1 = vld [vmem:[#allocation2 + $0x1b8] sm:$0xff] }
 0x208   : > { %v722_v37 = vadd.f32 %v720_v54, %v668_v61  ;;  %v539_v54 = vmul.f32 %v538_v26, %v530_v23  ;;  %v643_v51 = vsel %vm410_vm14, %v1576_v22, %v1584_v29  ;;  %v592_v16 = vmul.f32 %v589_v58, %v584_v41  ;;  %v724_v26 = vld [vmem:[#allocation2 + $0x1b0] sm:$0xff]  ;;  %v737_v23 = vld [vmem:[#allocation2 + $0x1c0] sm:$0xff]  ;;  %v738_v15 = vld [vmem:[#allocation2 + $0x1c8] sm:$0xff]  ;;  %v798_v44 = vpop.permute.xlu0 %797 }
 0x209   : > { %v812_v14 = vpop.permute.xlu1 %811  ;;  %v776_v27 = vadd.f32 %v774_v3, %v721_v36  ;;  %v730_v61 = vsel %vm471_vm11, %v1591_v35, %v1614_v6  ;;  %v634_v22 = vadd.f32 %v632_v42, %v1616_v10  ;;  %v635_v29 = vadd.f32 %v633_v43, %v1618_v12  ;;  %v780_v10 = vld [vmem:[#allocation2 + $0x1f8] sm:$0xff] }
 0x20a   : > { %v814_v38 = vsel %vm813_vm0, %v810_v47, %v812_v14  ;;  %v815_v13 = vsel %vm813_vm0, %v812_v14, %v810_v47  ;;  %v777_v34 = vadd.f32 %v775_v48, %v722_v37  ;;  %v645_v58 = vmul.f32 %v644_v24, %v637_v56 }
 0x20b   : > { %v816_v4 = vmul.f32 %v814_v38, %v807_v63  ;;  %v817_v5 = vmul.f32 %v815_v13, %v808_v11  ;;  %v731_v63 = vsel %vm471_vm11, %v1614_v6, %v1591_v35  ;;  %v646_v7 = vmul.f32 %v643_v51, %v638_v28  ;;  %v684_v11 = vld [vmem:[#allocation2 + $0x180] sm:$0xff]  ;;  %v779_v6 = vld [vmem:[#allocation2 + $0x1f0] sm:$0xff] }
 0x20c   : > { %v692_v35 = vsel %vm690_vm10, %v1601_v57, %v1588_v32  ;;  %v593_v48 = vadd.f32 %v591_v31, %v539_v54  ;;  %v594_v14 = vadd.f32 %v592_v16, %v540_v55  ;;  %v732_v36 = vmul.f32 %v730_v61, %v724_v26  ;;  %v794_v54 = vld [vmem:[#allocation2 + $0x208] sm:$0xff] }
 0x20d   : > { %v818_v47 = vadd.f32 %v816_v4, %v762_v8  ;;  %v819_v52 = vadd.f32 %v817_v5, %v763_v9  ;;  %v742_v53 = vpop.permute.xlu1 %741  ;;  %v733_v37 = vmul.f32 %v731_v63, %v725_v1  ;;  %v681_v38 = vadd.f32 %v679_v60, %v634_v22 }
 0x20e   : > { %v682_v13 = vadd.f32 %v680_v62, %v635_v29  ;;  %v744_v8 = vsel %vm743_vm9, %v740_v25, %v742_v53  ;;  %v745_v32 = vsel %vm743_vm9, %v742_v53, %v740_v25  ;;  %v693_v57 = vmul.f32 %v691_v39, %v684_v11 }
 0x20f   : > { %v820_v59 = vadd.f32 %v818_v47, %v776_v27  ;;  %v821_v49 = vadd.f32 %v819_v52, %v777_v34  ;;  %v694_v9 = vmul.f32 %v692_v35, %v685_v46  ;;  %v647_v40 = vadd.f32 %v645_v58, %v593_v48  ;;  %v793_v52 = vld [vmem:[#allocation2 + $0x200] sm:$0xff] }
 0x210   : > { %v648_v41 = vadd.f32 %v646_v7, %v594_v14  ;;  %vm799_vm11 = vcmp.lt.s32.totalorder %v1477_v50, 95  ;;  %v734_v42 = vadd.f32 %v732_v36, %v681_v38  ;;  %v735_v43 = vadd.f32 %v733_v37, %v682_v13 }
 0x211   : > { %v784_v2 = vpop.permute.xlu1 %783  ;;  %v746_v45 = vmul.f32 %v744_v8, %v737_v23  ;;  %v747_v17 = vmul.f32 %v745_v32, %v738_v15  ;;  %v695_v0 = vadd.f32 %v693_v57, %v647_v40  ;;  %v800_v25 = vsel %vm799_vm11, %v1544_v19, %v798_v44 }
 0x212   : > { %v786_v12 = vsel %vm785_vm13, %v782_v18, %v784_v2  ;;  %v787_v3 = vsel %vm785_vm13, %v784_v2, %v782_v18  ;;  %v696_v27 = vadd.f32 %v694_v9, %v648_v41  ;;  %v801_v53 = vsel %vm799_vm11, %v798_v44, %v1544_v19 }
 0x213   : > { %v788_v4 = vmul.f32 %v786_v12, %v779_v6  ;;  %v789_v5 = vmul.f32 %v787_v3, %v780_v10  ;;  %v748_v55 = vadd.f32 %v746_v45, %v695_v0  ;;  %v802_v28 = vmul.f32 %v800_v25, %v793_v52 }
 0x214   : > { %v749_v56 = vadd.f32 %v747_v17, %v696_v27  ;;  %v803_v51 = vmul.f32 %v801_v53, %v794_v54  ;;  %v492_v29 = vmax.f32 %v1547_v20, 0.0  ;;  %v491_v19 = vmax.f32 %v1550_v21, 0.0 }
 0x215   : > { %v790_v34 = vadd.f32 %v788_v4, %v734_v42  ;;  %v791_v47 = vadd.f32 %v789_v5, %v735_v43  ;;  %v804_v31 = vadd.f32 %v802_v28, %v748_v55  ;;  %vm840_vm14 = vcmask 130048  }
 0x216   : > { %v805_v16 = vadd.f32 %v803_v51, %v749_v56 }
 0x217   : > { %v822_v50 = vadd.f32 %v820_v59, %v790_v34  ;;  %v823_v24 = vadd.f32 %v821_v49, %v791_v47  ;;  %v213_v59 = vld [vmem:[%s1771_s1 + $0x10] sm:$0xff] }
 0x219   : > { %v824_v60 = vadd.f32 %v822_v50, %v804_v31  ;;  %v825_v62 = vadd.f32 %v823_v24, %v805_v16  ;;  %v838_v49 = vpop.permute.xlu0 %837 }
 0x222   : > { %v829_v26 = vpop.permute.xlu1 %828 }
 0x223   : > { %v831_v1 = vadd.f32 %v829_v26, %v824_v60  ;;  %v832_v61 = vadd.f32 %v829_v26, %v825_v62 }
 0x225   : > { %v833_v63 = vmax.f32 %v831_v1, 0.0  ;;  %v834_v22 = vmax.f32 %v832_v61, 0.0 }
 0x227   : > { %v1026_v58 = vpack.c.bf16 %v834_v22, %v492_v29  ;;  %v1028_v7 = vpack.c.bf16 %v833_v63, %v491_v19 }
 0x229   : > { %1027 = vmatprep.subr.bf16.mxu1 %v1026_v58 }
 0x22a   : > { %1029 = vmatpush1.bf16.msra.mxu1 %v1028_v7 }
 0x22d   : > { %1018 = vmatmul.mubr.msk.f32.vlgmr.msra.gmra.mrb[0].mxu1 %vm840_vm14, %v213_v59 }
 0x300   : > { %v910_v11 = vpop.f32.mrb[0].mxu1 }
 0x301   : > { %v911_v18 = vadd.f32 %v910_v11, %v838_v49  ;;  %v912_v2 = vpop.f32.mrb[1].mxu1 }
 0x302   : > { %v913_v20 = vadd.f32 %v912_v2, %v838_v49 }
 0x303   : > { %v915_v21 = vadd.f32 %v911_v18, %v1374_v33 }
 0x304   : > { %v916_v46 = vadd.f32 %v913_v20, %v1368_v30 }
 0x305   : > { %v917_v39 = vmax.f32 %v915_v21, 0.0 }
 0x306   : > { %v918_v35 = vmax.f32 %v916_v46, 0.0 }
 0x307   : > { %919 = vst [vmem:[%s205_s14] sm:$0xff] %v917_v39 }
 0x308   : > { %920 = vst [vmem:[%s205_s14 + $0x8] sm:$0xff] %v918_v35 }
 0x309   : > { %1151 = shalt.err (!%p1148_p7)
}
 0x30a   : > { %s1152_s6 = scalar_lea.hbm %s1728_s23, 256  ;;  %s1156_s9 = scalar_lea.hbm %s1774_s4, 512 }
 0x30b   : > { %p1153_p8 = scmp.ne.s32.totalorder %s1728_s23, %s1152_s6  ;;  %p1157_p1 = scmp.lt.u32.totalorder %s1728_s23, %s1774_s4 }
 0x30c   : > { %p1158_p0 = scmp.lt.u32.totalorder %s1156_s9, %s1152_s6  ;;  %p1160_p6 = scmp.lt.u32.totalorder %s1152_s6, %s1728_s23 }
 0x30d   : > { %p1154_p11 = pnand %p1153_p8, %p1785_p9 }
 0x30e   : > { %p1159_p5 = por %p1158_p0, %p1157_p1 }
 0x30f   : > { %p1155_p13 = pneg %p1154_p11 }
 0x310   : > { %p1161_p10 = por %p1160_p6, %p1159_p5 }
 0x312   : > { %p1162_p12 = pnand %p1161_p10, %p1155_p13 }
 0x314   : > { %1165 = shalt.err (!%p1162_p12)
}
 0x315   : > { %1034 = dma.vmem_to_hbm [thread:$0]  (%p1785_p9), %s1730_s20, 256, %s1728_s23, %s922_s27  }
 0x316 PF: > { %p1046_p2 = scmp.ge.s32.totalorder %s1204_s18, 2  ;;  %s948_s12 = sand.u32 1, %s1192_s15  }
 0x317   : > { %p1786_p3 = scmp.ne.s32.totalorder %s1779_s26, 0  ;;  %s949_s13 = scalar_lea.sflag [#allocation4], %s948_s12 }
 0x319   : > { %p1041_p4 = pnand %p1046_p2, %p1786_p3 }
 0x31b   : > { %1187 = dma.done.wait (!%p1041_p4), %s949_s13, 256  }
 0x31c   : > { %1189 = vsyncadd (!%p1041_p4), %s949_s13, 4294967040  ;;  %p15_p7 = scmp.ge.s32.totalorder %s1286_s21, 4   ;;  %s1787_s15 = smov %s1196_s16 }
 0x31d   : > { %s1788_s16 = smov %s1200_s17  ;;  %s1789_s17 = smov %s1297_s24 }
 0x31e   : > { %s1790_s18 = smov %s1286_s21  ;;  %17 = sbr.rel (!%p15_p7) target bundleno = 4 (0x4), region = 109 }
 0x325   :  { %954 = vsyncpa [#allocation3], 1 }
 0x326   :  { %956 = vsyncpa [#allocation3 + $0x1], 1 }
 0x327   :  { %957 = vsyncpa [#allocation4], 1 }
 0x328   :  { %959 = vsyncpa [#allocation4 + $0x1], 1 }

</bundles_post_ra>
